<compile_context>
chip_gen: v7x
topology: tpu7x:2x2x1
jax: 0.10.0
libtpu: 0.0.40
codegen_flags: <defaults>
</compile_context>

<pallas_src>
import math
import functools

import jax
import jax.numpy as jnp
from jax import lax
from jax.experimental import pallas as pl
from jax.experimental.pallas import tpu as pltpu


# ---------------------------------------------------------------------------
# Tile-size helper: largest multiple of `align` that divides `dim` and is
# <= target; falls back to the full dim (always legal for a BlockSpec).
# ---------------------------------------------------------------------------
def _pick_tile(dim, target, align):
    if dim <= target:
        return dim
    t = (target // align) * align
    while t >= align:
        if dim % t == 0:
            return t
        t -= align
    return dim


# ---------------------------------------------------------------------------
# Kernel 1: fused linear projection  y = x @ Wt + b
# Single MXU dot per tile (no K reduction axis), bf16 operands, f32 acc,
# bf16 output.
# ---------------------------------------------------------------------------
def _proj_kernel(x_ref, wt_ref, b_ref, o_ref):
    xb = x_ref[...].astype(wt_ref.dtype)
    o_ref[...] = (jnp.dot(xb, wt_ref[...], preferred_element_type=jnp.float32)
                  + b_ref[...]).astype(o_ref.dtype)


def qkv_projection(x2d, wt, b2, *, out_dtype=jnp.bfloat16, tm=512, tn=256):
    # x2d: (M, C); wt: (C, 3C) pre-transposed bf16 weight; b2: (1, 3C) f32.
    M, C = x2d.shape
    N = wt.shape[1]

    tm = _pick_tile(M, tm, 8)
    tn = _pick_tile(N, tn, 128)
    grid = (M // tm, N // tn)

    return pl.pallas_call(
        _proj_kernel,
        out_shape=jax.ShapeDtypeStruct((M, N), out_dtype),
        grid_spec=pltpu.PrefetchScalarGridSpec(
            num_scalar_prefetch=0,
            grid=grid,
            in_specs=[
                pl.BlockSpec((tm, C), lambda i, j: (i, 0)),
                pl.BlockSpec((C, tn), lambda i, j: (0, j)),
                pl.BlockSpec((1, tn), lambda i, j: (0, j)),
            ],
            out_specs=pl.BlockSpec((tm, tn), lambda i, j: (i, j)),
        ),
        compiler_params=pltpu.CompilerParams(
            dimension_semantics=("parallel", "parallel")),
    )(x2d, wt, b2)


# ---------------------------------------------------------------------------
# Kernel 2: flash-style attention over the packed (B, T, 3C) qkv tensor.
# Grid (B, nq, nkv); q / output resident across the kv axis; per-head online
# softmax with f32 m/l/acc scratch; bf16 MXU operands, f32 accumulation.
# ---------------------------------------------------------------------------
def _make_flash_attn_kernel(n_head, head_dim):
    scale = 1.0 / math.sqrt(head_dim)

    def kernel(q_ref, k_ref, v_ref, o_ref, m_ref, l_ref, acc_ref):
        # q_ref : (1, tq,  C)  bf16   (q columns of qkv)
        # k_ref : (1, tkv, C)  bf16   (k columns of qkv)
        # v_ref : (1, tkv, C)  bf16   (v columns of qkv)
        # o_ref : (1, tq,  C)
        # m_ref, l_ref: (n_head, tq, 1) f32 ; acc_ref: (tq, C) f32
        kv = pl.program_id(2)

        @pl.when(kv == 0)
        def _():
            m_ref[...] = jnp.full_like(m_ref, -jnp.inf)
            l_ref[...] = jnp.zeros_like(l_ref)
            acc_ref[...] = jnp.zeros_like(acc_ref)

        for h in range(n_head):
            c0 = h * head_dim
            qh = q_ref[0, :, c0:c0 + head_dim]          # (tq,  hd) bf16
            kh = k_ref[0, :, c0:c0 + head_dim]          # (tkv, hd) bf16
            vh = v_ref[0, :, c0:c0 + head_dim]          # (tkv, hd) bf16

            # scores = (q k^T) * scale  -- bf16 operands, f32 accumulator,
            # contraction over the last dims (no in-kernel transpose).
            s = lax.dot_general(qh, kh, (((1,), (1,)), ((), ())),
                                preferred_element_type=jnp.float32) * scale

            m_prev = m_ref[h]                           # (tq, 1)
            m_cur = jnp.maximum(m_prev, jnp.max(s, axis=-1, keepdims=True))
            alpha = jnp.exp(m_prev - m_cur)
            p = jnp.exp(s - m_cur)                      # (tq, tkv) f32

            l_ref[h] = alpha * l_ref[h] + jnp.sum(p, axis=-1, keepdims=True)
            acc_ref[:, c0:c0 + head_dim] = (
                alpha * acc_ref[:, c0:c0 + head_dim]
                + jnp.dot(p.astype(vh.dtype), vh,
                          preferred_element_type=jnp.float32))
            m_ref[h] = m_cur

        @pl.when(kv == pl.num_programs(2) - 1)
        def _():
            for h in range(n_head):
                c0 = h * head_dim
                acc_ref[:, c0:c0 + head_dim] *= pl.reciprocal(l_ref[h],
                                                              approx=True)
            # One lane-dense (tq, C) store; output already in (B, T, C) layout.
            o_ref[0] = acc_ref[...].astype(o_ref.dtype)

    return kernel


def mha_attention_from_qkv(qkv, n_head, *, tq=256, tkv=512, out_dtype=None):
    # qkv: (B, T, 3C) packed [q | k | v], bf16.
    B, T, threeC = qkv.shape
    C = threeC // 3
    hd = C // n_head
    out_dtype = qkv.dtype if out_dtype is None else out_dtype

    if C % 128 != 0:
        raise ValueError(
            f"3-way qkv column split needs n_embd % 128 == 0, got C={C}")

    tq = _pick_tile(T, tq, 8)
    tkv = _pick_tile(T, tkv, 8)
    nq = T // tq
    nkv = T // tkv

    kernel = _make_flash_attn_kernel(n_head, hd)

    return pl.pallas_call(
        kernel,
        out_shape=jax.ShapeDtypeStruct((B, T, C), out_dtype),
        grid_spec=pltpu.PrefetchScalarGridSpec(
            num_scalar_prefetch=0,
            grid=(B, nq, nkv),
            in_specs=[
                # q chunk: columns [0, C)
                pl.BlockSpec((1, tq, C), lambda b, qi, kv: (b, qi, 0)),
                # k chunk: columns [C, 2C)
                pl.BlockSpec((1, tkv, C), lambda b, qi, kv: (b, kv, 1)),
                # v chunk: columns [2C, 3C)
                pl.BlockSpec((1, tkv, C), lambda b, qi, kv: (b, kv, 2)),
            ],
            out_specs=pl.BlockSpec((1, tq, C), lambda b, qi, kv: (b, qi, 0)),
            scratch_shapes=[
                pltpu.VMEM((n_head, tq, 1), jnp.float32),   # running max m
                pltpu.VMEM((n_head, tq, 1), jnp.float32),   # running sum l
                pltpu.VMEM((tq, C), jnp.float32),           # output accumulator
            ],
        ),
        compiler_params=pltpu.CompilerParams(
            dimension_semantics=("parallel", "parallel", "arbitrary")),
    )(qkv, qkv, qkv)


# ---------------------------------------------------------------------------
# Full module forward (matches the PyTorch MultiHeadSelfAttention.forward).
# wt / b2 are the init-time-prepared params: wt = W.T in bf16, b2 = (1, 3C) f32.
# ---------------------------------------------------------------------------
def multi_head_self_attention(x, wt, b2, n_head):
    B, T, C = x.shape
    qkv = qkv_projection(x.reshape(B * T, C), wt, b2)        # (B*T, 3C) bf16
    qkv = qkv.reshape(B, T, 3 * C)
    return mha_attention_from_qkv(qkv, n_head, out_dtype=x.dtype)   # (B, T, C)


# ---------------------------------------------------------------------------
# Pure-JAX reference (same bf16-operand / f32-accumulate numerics).
# ---------------------------------------------------------------------------
def _reference(x, w, b, n_head):
    B, T, C = x.shape
    hd = C // n_head
    qkv = (jnp.dot(x.reshape(B * T, C).astype(jnp.bfloat16),
                   w.T.astype(jnp.bfloat16),
                   preferred_element_type=jnp.float32)
           + b.astype(jnp.float32)).astype(jnp.bfloat16)
    qkv = qkv.reshape(B, T, 3 * C)
    q, k, v = jnp.split(qkv, 3, axis=-1)
    q = q.reshape(B, T, n_head, hd).transpose(0, 2, 1, 3)
    k = k.reshape(B, T, n_head, hd).transpose(0, 2, 1, 3)
    v = v.reshape(B, T, n_head, hd).transpose(0, 2, 1, 3)
    scores = jnp.einsum("bhqd,bhkd->bhqk", q, k,
                        preferred_element_type=jnp.float32) / math.sqrt(hd)
    attn = jax.nn.softmax(scores, axis=-1)
    y = jnp.einsum("bhqk,bhkd->bhqd", attn.astype(jnp.bfloat16), v,
                   preferred_element_type=jnp.float32)
    return y.transpose(0, 2, 1, 3).reshape(B, T, C).astype(x.dtype)


if __name__ == "__main__":
    # Small but lane-aligned shapes: head_dim = 32, n_embd = 128.
    B, T, n_head, C = 2, 16, 4, 128

    key = jax.random.PRNGKey(0)
    kx, kw, kb = jax.random.split(key, 3)
    x = jax.random.normal(kx, (B, T, C), dtype=jnp.float32)
    # Deterministic Linear(C, 3C) params (torch layout: weight (3C, C), bias (3C,))
    w = jax.random.normal(kw, (3 * C, C), dtype=jnp.float32) * (1.0 / math.sqrt(C))
    b = jax.random.normal(kb, (3 * C,), dtype=jnp.float32) * 0.02

    # Init-time param prep (hoisted out of the forward, done once):
    wt = jnp.asarray(w.T, dtype=jnp.bfloat16)          # (C, 3C)
    b2 = b.reshape(1, 3 * C).astype(jnp.float32)       # (1, 3C)

    fwd = jax.jit(functools.partial(multi_head_self_attention, n_head=n_head))
    y = jax.block_until_ready(fwd(x, wt, b2))

    y_ref = _reference(x, w, b, n_head)
    assert y.shape == y_ref.shape
    # Tolerance covers bf16 matmul-operand rounding + approx reciprocal softmax.
    assert jnp.allclose(y, y_ref, atol=2e-2, rtol=2e-2), "mismatch vs reference"

    print("KERNEL_OK")
</pallas_src>

<mosaic_0001>
module attributes {stable_mosaic.version = 11 : i64} {
  func.func @_proj_kernel(%arg0: i32, %arg1: i32, %arg2: memref<32x128xf32, #tpu.memory_space<vmem>>, %arg3: memref<128x128xbf16, #tpu.memory_space<vmem>>, %arg4: memref<1x128xf32, #tpu.memory_space<vmem>>, %arg5: memref<32x128xbf16, #tpu.memory_space<vmem>>) attributes {dimension_semantics = [#tpu.dimension_semantics<parallel>, #tpu.dimension_semantics<parallel>], iteration_bounds = array<i64: 1, 3>, scalar_prefetch = 0 : i64, scratch_operands = 0 : i64, tpu.core_type = #tpu.core_type<tc>, window_params = [{transform_indices = @transform_0, window_bounds = array<i64: 32, 128>}, {transform_indices = @transform_1, window_bounds = array<i64: 128, 128>}, {transform_indices = @transform_2, window_bounds = array<i64: 1, 128>}, {transform_indices = @transform_3, window_bounds = array<i64: 32, 128>}]} {
    %c0 = arith.constant 0 : index
    %c0_0 = arith.constant 0 : index
    %0 = vector.load %arg2[%c0, %c0_0] : memref<32x128xf32, #tpu.memory_space<vmem>>, vector<32x128xf32>
    %1 = arith.truncf %0 : vector<32x128xf32> to vector<32x128xbf16>
    %c0_1 = arith.constant 0 : index
    %c0_2 = arith.constant 0 : index
    %2 = vector.load %arg3[%c0_1, %c0_2] : memref<128x128xbf16, #tpu.memory_space<vmem>>, vector<128x128xbf16>
    %cst = arith.constant dense<0.000000e+00> : vector<32x128xf32>
    %3 = tpu.matmul %1, %2, %cst {dimension_numbers = #tpu.dot_dimension_numbers<[1], [0], [0], [1], [0, 0, 1, 1], [], []>} : vector<32x128xbf16>, vector<128x128xbf16>, vector<32x128xf32> -> vector<32x128xf32>
    %c0_3 = arith.constant 0 : index
    %c0_4 = arith.constant 0 : index
    %4 = vector.load %arg4[%c0_3, %c0_4] : memref<1x128xf32, #tpu.memory_space<vmem>>, vector<1x128xf32>
    %5 = vector.broadcast %4 : vector<1x128xf32> to vector<32x128xf32>
    %6 = arith.addf %3, %5 : vector<32x128xf32>
    %7 = arith.truncf %6 : vector<32x128xf32> to vector<32x128xbf16>
    %c0_5 = arith.constant 0 : index
    %c0_6 = arith.constant 0 : index
    %8 = vector.load %arg5[%c0_5, %c0_6] : memref<32x128xbf16, #tpu.memory_space<vmem>>, vector<32x128xbf16>
    tpu.vector_store %arg5[%c0_5, %c0_6], %7 {strides = array<i32>} : memref<32x128xbf16, #tpu.memory_space<vmem>>, vector<32x128xbf16>,
    return
  }
  func.func @transform_0(%arg0: i32, %arg1: i32) -> (i32, i32) {
    %c0_i32 = arith.constant 0 : i32
    %c0_i32_0 = arith.constant 0 : i32
    return %arg0, %c0_i32 : i32, i32
  }
  func.func @transform_1(%arg0: i32, %arg1: i32) -> (i32, i32) {
    %c0_i32 = arith.constant 0 : i32
    %c0_i32_0 = arith.constant 0 : i32
    return %c0_i32, %arg1 : i32, i32
  }
  func.func @transform_2(%arg0: i32, %arg1: i32) -> (i32, i32) {
    %c0_i32 = arith.constant 0 : i32
    %c0_i32_0 = arith.constant 0 : i32
    return %c0_i32, %arg1 : i32, i32
  }
  func.func @transform_3(%arg0: i32, %arg1: i32) -> (i32, i32) {
    %c0_i32 = arith.constant 0 : i32
    return %arg0, %arg1 : i32, i32
  }
}

module attributes {stable_mosaic.version = 11 : i64} {
  func.func @kernel(%arg0: i32, %arg1: i32, %arg2: i32, %arg3: memref<1x16x128xbf16, #tpu.memory_space<vmem>>, %arg4: memref<1x16x128xbf16, #tpu.memory_space<vmem>>, %arg5: memref<1x16x128xbf16, #tpu.memory_space<vmem>>, %arg6: memref<1x16x128xf32, #tpu.memory_space<vmem>>, %arg7: memref<4x16x1xf32, #tpu.memory_space<vmem>>, %arg8: memref<4x16x1xf32, #tpu.memory_space<vmem>>, %arg9: memref<16x128xf32, #tpu.memory_space<vmem>>) attributes {dimension_semantics = [#tpu.dimension_semantics<parallel>, #tpu.dimension_semantics<parallel>, #tpu.dimension_semantics<arbitrary>], iteration_bounds = array<i64: 2, 1, 1>, scalar_prefetch = 0 : i64, scratch_operands = 3 : i64, tpu.core_type = #tpu.core_type<tc>, window_params = [{transform_indices = @transform_0, window_bounds = array<i64: 1, 16, 128>}, {transform_indices = @transform_1, window_bounds = array<i64: 1, 16, 128>}, {transform_indices = @transform_2, window_bounds = array<i64: 1, 16, 128>}, {transform_indices = @transform_3, window_bounds = array<i64: 1, 16, 128>}]} {
    %c0_i32 = arith.constant 0 : i32
    %0 = arith.cmpi eq, %arg2, %c0_i32 : i32
    %1 = arith.extui %0 : i1 to i32
    %c0_i32_0 = arith.constant 0 : i32
    %2 = arith.cmpi ne, %1, %c0_i32_0 : i32
    scf.if %2 {
      %cst_115 = arith.constant 0xFF800000 : f32
      %158 = vector.broadcast %cst_115 : f32 to vector<4x16x1xf32>
      %c0_116 = arith.constant 0 : index
      %c0_117 = arith.constant 0 : index
      %c0_118 = arith.constant 0 : index
      %159 = vector.load %arg7[%c0_116, %c0_117, %c0_118] : memref<4x16x1xf32, #tpu.memory_space<vmem>>, vector<4x16x1xf32>
      tpu.vector_store %arg7[%c0_116, %c0_117, %c0_118], %158 {strides = array<i32>} : memref<4x16x1xf32, #tpu.memory_space<vmem>>, vector<4x16x1xf32>,
      %cst_119 = arith.constant 0.000000e+00 : f32
      %160 = vector.broadcast %cst_119 : f32 to vector<4x16x1xf32>
      %c0_120 = arith.constant 0 : index
      %c0_121 = arith.constant 0 : index
      %c0_122 = arith.constant 0 : index
      %161 = vector.load %arg8[%c0_120, %c0_121, %c0_122] : memref<4x16x1xf32, #tpu.memory_space<vmem>>, vector<4x16x1xf32>
      tpu.vector_store %arg8[%c0_120, %c0_121, %c0_122], %160 {strides = array<i32>} : memref<4x16x1xf32, #tpu.memory_space<vmem>>, vector<4x16x1xf32>,
      %cst_123 = arith.constant 0.000000e+00 : f32
      %162 = vector.broadcast %cst_123 : f32 to vector<16x128xf32>
      %c0_124 = arith.constant 0 : index
      %c0_125 = arith.constant 0 : index
      %163 = vector.load %arg9[%c0_124, %c0_125] : memref<16x128xf32, #tpu.memory_space<vmem>>, vector<16x128xf32>
      tpu.vector_store %arg9[%c0_124, %c0_125], %162 {strides = array<i32>} : memref<16x128xf32, #tpu.memory_space<vmem>>, vector<16x128xf32>,
    } else {
    }
    %c0 = arith.constant 0 : index
    %c0_1 = arith.constant 0 : index
    %c0_2 = arith.constant 0 : index
    %3 = vector.load %arg3[%c0, %c0_1, %c0_2] : memref<1x16x128xbf16, #tpu.memory_space<vmem>>, vector<1x16x32xbf16>
    %4 = vector.shape_cast %3 : vector<1x16x32xbf16> to vector<16x32xbf16>
    %c0_3 = arith.constant 0 : index
    %c0_4 = arith.constant 0 : index
    %c0_5 = arith.constant 0 : index
    %5 = vector.load %arg4[%c0_3, %c0_4, %c0_5] : memref<1x16x128xbf16, #tpu.memory_space<vmem>>, vector<1x16x32xbf16>
    %6 = vector.shape_cast %5 : vector<1x16x32xbf16> to vector<16x32xbf16>
    %c0_6 = arith.constant 0 : index
    %c0_7 = arith.constant 0 : index
    %c0_8 = arith.constant 0 : index
    %7 = vector.load %arg5[%c0_6, %c0_7, %c0_8] : memref<1x16x128xbf16, #tpu.memory_space<vmem>>, vector<1x16x32xbf16>
    %8 = vector.shape_cast %7 : vector<1x16x32xbf16> to vector<16x32xbf16>
    %cst = arith.constant dense<0.000000e+00> : vector<16x16xf32>
    %9 = tpu.matmul %4, %6, %cst {dimension_numbers = #tpu.dot_dimension_numbers<[1], [1], [0], [0], [0, 0, 1, 0], [], []>} : vector<16x32xbf16>, vector<16x32xbf16>, vector<16x16xf32> -> vector<16x16xf32>
    %cst_9 = arith.constant 0.176776692 : f32
    %10 = vector.broadcast %cst_9 : f32 to vector<16x16xf32>
    %11 = arith.mulf %9, %10 : vector<16x16xf32>
    %c0_10 = arith.constant 0 : index
    %c0_11 = arith.constant 0 : index
    %c0_12 = arith.constant 0 : index
    %12 = vector.load %arg7[%c0_10, %c0_11, %c0_12] : memref<4x16x1xf32, #tpu.memory_space<vmem>>, vector<1x16x1xf32>
    %13 = vector.shape_cast %12 : vector<1x16x1xf32> to vector<16x1xf32>
    %cst_13 = arith.constant dense<0xFF800000> : vector<16xf32>
    %14 = vector.multi_reduction <maximumf>, %11, %cst_13 [1] : vector<16x16xf32> to vector<16xf32>
    %15 = vector.shape_cast %14 : vector<16xf32> to vector<16x1xf32>
    %16 = arith.maximumf %13, %15 : vector<16x1xf32>
    %17 = arith.subf %13, %16 : vector<16x1xf32>
    %18 = math.exp %17 : vector<16x1xf32>
    %19 = vector.broadcast %16 : vector<16x1xf32> to vector<16x16xf32>
    %20 = arith.subf %11, %19 : vector<16x16xf32>
    %21 = math.exp %20 : vector<16x16xf32>
    %c0_14 = arith.constant 0 : index
    %c0_15 = arith.constant 0 : index
    %c0_16 = arith.constant 0 : index
    %22 = vector.load %arg8[%c0_14, %c0_15, %c0_16] : memref<4x16x1xf32, #tpu.memory_space<vmem>>, vector<1x16x1xf32>
    %23 = vector.shape_cast %22 : vector<1x16x1xf32> to vector<16x1xf32>
    %24 = arith.mulf %18, %23 : vector<16x1xf32>
    %cst_17 = arith.constant dense<0.000000e+00> : vector<16xf32>
    %25 = vector.multi_reduction <add>, %21, %cst_17 [1] : vector<16x16xf32> to vector<16xf32>
    %26 = vector.shape_cast %25 : vector<16xf32> to vector<16x1xf32>
    %27 = arith.addf %24, %26 : vector<16x1xf32>
    %c0_18 = arith.constant 0 : index
    %c0_19 = arith.constant 0 : index
    %c0_20 = arith.constant 0 : index
    %28 = vector.load %arg8[%c0_18, %c0_19, %c0_20] : memref<4x16x1xf32, #tpu.memory_space<vmem>>, vector<1x16x1xf32>
    %29 = vector.shape_cast %28 : vector<1x16x1xf32> to vector<16x1xf32>
    %30 = vector.shape_cast %27 : vector<16x1xf32> to vector<1x16x1xf32>
    tpu.vector_store %arg8[%c0_18, %c0_19, %c0_20], %30 {strides = array<i32>} : memref<4x16x1xf32, #tpu.memory_space<vmem>>, vector<1x16x1xf32>,
    %c0_21 = arith.constant 0 : index
    %c0_22 = arith.constant 0 : index
    %31 = vector.load %arg9[%c0_21, %c0_22] : memref<16x128xf32, #tpu.memory_space<vmem>>, vector<16x32xf32>
    %32 = vector.broadcast %18 : vector<16x1xf32> to vector<16x32xf32>
    %33 = arith.mulf %32, %31 : vector<16x32xf32>
    %34 = arith.truncf %21 : vector<16x16xf32> to vector<16x16xbf16>
    %cst_23 = arith.constant dense<0.000000e+00> : vector<16x32xf32>
    %35 = tpu.matmul %34, %8, %cst_23 {dimension_numbers = #tpu.dot_dimension_numbers<[1], [0], [0], [1], [0, 0, 1, 1], [], []>} : vector<16x16xbf16>, vector<16x32xbf16>, vector<16x32xf32> -> vector<16x32xf32>
    %36 = arith.addf %33, %35 : vector<16x32xf32>
    %c0_24 = arith.constant 0 : index
    %c0_25 = arith.constant 0 : index
    %37 = vector.load %arg9[%c0_24, %c0_25] : memref<16x128xf32, #tpu.memory_space<vmem>>, vector<16x32xf32>
    tpu.vector_store %arg9[%c0_24, %c0_25], %36 {strides = array<i32>} : memref<16x128xf32, #tpu.memory_space<vmem>>, vector<16x32xf32>,
    %c0_26 = arith.constant 0 : index
    %c0_27 = arith.constant 0 : index
    %c0_28 = arith.constant 0 : index
    %38 = vector.load %arg7[%c0_26, %c0_27, %c0_28] : memref<4x16x1xf32, #tpu.memory_space<vmem>>, vector<1x16x1xf32>
    %39 = vector.shape_cast %38 : vector<1x16x1xf32> to vector<16x1xf32>
    %40 = vector.shape_cast %16 : vector<16x1xf32> to vector<1x16x1xf32>
    tpu.vector_store %arg7[%c0_26, %c0_27, %c0_28], %40 {strides = array<i32>} : memref<4x16x1xf32, #tpu.memory_space<vmem>>, vector<1x16x1xf32>,
    %c0_29 = arith.constant 0 : index
    %c0_30 = arith.constant 0 : index
    %c32 = arith.constant 32 : index
    %41 = vector.load %arg3[%c0_29, %c0_30, %c32] : memref<1x16x128xbf16, #tpu.memory_space<vmem>>, vector<1x16x32xbf16>
    %42 = vector.shape_cast %41 : vector<1x16x32xbf16> to vector<16x32xbf16>
    %c0_31 = arith.constant 0 : index
    %c0_32 = arith.constant 0 : index
    %c32_33 = arith.constant 32 : index
    %43 = vector.load %arg4[%c0_31, %c0_32, %c32_33] : memref<1x16x128xbf16, #tpu.memory_space<vmem>>, vector<1x16x32xbf16>
    %44 = vector.shape_cast %43 : vector<1x16x32xbf16> to vector<16x32xbf16>
    %c0_34 = arith.constant 0 : index
    %c0_35 = arith.constant 0 : index
    %c32_36 = arith.constant 32 : index
    %45 = vector.load %arg5[%c0_34, %c0_35, %c32_36] : memref<1x16x128xbf16, #tpu.memory_space<vmem>>, vector<1x16x32xbf16>
    %46 = vector.shape_cast %45 : vector<1x16x32xbf16> to vector<16x32xbf16>
    %cst_37 = arith.constant dense<0.000000e+00> : vector<16x16xf32>
    %47 = tpu.matmul %42, %44, %cst_37 {dimension_numbers = #tpu.dot_dimension_numbers<[1], [1], [0], [0], [0, 0, 1, 0], [], []>} : vector<16x32xbf16>, vector<16x32xbf16>, vector<16x16xf32> -> vector<16x16xf32>
    %cst_38 = arith.constant 0.176776692 : f32
    %48 = vector.broadcast %cst_38 : f32 to vector<16x16xf32>
    %49 = arith.mulf %47, %48 : vector<16x16xf32>
    %c1 = arith.constant 1 : index
    %c0_39 = arith.constant 0 : index
    %c0_40 = arith.constant 0 : index
    %50 = vector.load %arg7[%c1, %c0_39, %c0_40] : memref<4x16x1xf32, #tpu.memory_space<vmem>>, vector<1x16x1xf32>
    %51 = vector.shape_cast %50 : vector<1x16x1xf32> to vector<16x1xf32>
    %cst_41 = arith.constant dense<0xFF800000> : vector<16xf32>
    %52 = vector.multi_reduction <maximumf>, %49, %cst_41 [1] : vector<16x16xf32> to vector<16xf32>
    %53 = vector.shape_cast %52 : vector<16xf32> to vector<16x1xf32>
    %54 = arith.maximumf %51, %53 : vector<16x1xf32>
    %55 = arith.subf %51, %54 : vector<16x1xf32>
    %56 = math.exp %55 : vector<16x1xf32>
    %57 = vector.broadcast %54 : vector<16x1xf32> to vector<16x16xf32>
    %58 = arith.subf %49, %57 : vector<16x16xf32>
    %59 = math.exp %58 : vector<16x16xf32>
    %c1_42 = arith.constant 1 : index
    %c0_43 = arith.constant 0 : index
    %c0_44 = arith.constant 0 : index
    %60 = vector.load %arg8[%c1_42, %c0_43, %c0_44] : memref<4x16x1xf32, #tpu.memory_space<vmem>>, vector<1x16x1xf32>
    %61 = vector.shape_cast %60 : vector<1x16x1xf32> to vector<16x1xf32>
    %62 = arith.mulf %56, %61 : vector<16x1xf32>
    %cst_45 = arith.constant dense<0.000000e+00> : vector<16xf32>
    %63 = vector.multi_reduction <add>, %59, %cst_45 [1] : vector<16x16xf32> to vector<16xf32>
    %64 = vector.shape_cast %63 : vector<16xf32> to vector<16x1xf32>
    %65 = arith.addf %62, %64 : vector<16x1xf32>
    %c1_46 = arith.constant 1 : index
    %c0_47 = arith.constant 0 : index
    %c0_48 = arith.constant 0 : index
    %66 = vector.load %arg8[%c1_46, %c0_47, %c0_48] : memref<4x16x1xf32, #tpu.memory_space<vmem>>, vector<1x16x1xf32>
    %67 = vector.shape_cast %66 : vector<1x16x1xf32> to vector<16x1xf32>
    %68 = vector.shape_cast %65 : vector<16x1xf32> to vector<1x16x1xf32>
    tpu.vector_store %arg8[%c1_46, %c0_47, %c0_48], %68 {strides = array<i32>} : memref<4x16x1xf32, #tpu.memory_space<vmem>>, vector<1x16x1xf32>,
    %c0_49 = arith.constant 0 : index
    %c32_50 = arith.constant 32 : index
    %69 = vector.load %arg9[%c0_49, %c32_50] : memref<16x128xf32, #tpu.memory_space<vmem>>, vector<16x32xf32>
    %70 = vector.broadcast %56 : vector<16x1xf32> to vector<16x32xf32>
    %71 = arith.mulf %70, %69 : vector<16x32xf32>
    %72 = arith.truncf %59 : vector<16x16xf32> to vector<16x16xbf16>
    %cst_51 = arith.constant dense<0.000000e+00> : vector<16x32xf32>
    %73 = tpu.matmul %72, %46, %cst_51 {dimension_numbers = #tpu.dot_dimension_numbers<[1], [0], [0], [1], [0, 0, 1, 1], [], []>} : vector<16x16xbf16>, vector<16x32xbf16>, vector<16x32xf32> -> vector<16x32xf32>
    %74 = arith.addf %71, %73 : vector<16x32xf32>
    %c0_52 = arith.constant 0 : index
    %c32_53 = arith.constant 32 : index
    %75 = vector.load %arg9[%c0_52, %c32_53] : memref<16x128xf32, #tpu.memory_space<vmem>>, vector<16x32xf32>
    tpu.vector_store %arg9[%c0_52, %c32_53], %74 {strides = array<i32>} : memref<16x128xf32, #tpu.memory_space<vmem>>, vector<16x32xf32>,
    %c1_54 = arith.constant 1 : index
    %c0_55 = arith.constant 0 : index
    %c0_56 = arith.constant 0 : index
    %76 = vector.load %arg7[%c1_54, %c0_55, %c0_56] : memref<4x16x1xf32, #tpu.memory_space<vmem>>, vector<1x16x1xf32>
    %77 = vector.shape_cast %76 : vector<1x16x1xf32> to vector<16x1xf32>
    %78 = vector.shape_cast %54 : vector<16x1xf32> to vector<1x16x1xf32>
    tpu.vector_store %arg7[%c1_54, %c0_55, %c0_56], %78 {strides = array<i32>} : memref<4x16x1xf32, #tpu.memory_space<vmem>>, vector<1x16x1xf32>,
    %c0_57 = arith.constant 0 : index
    %c0_58 = arith.constant 0 : index
    %c64 = arith.constant 64 : index
    %79 = vector.load %arg3[%c0_57, %c0_58, %c64] : memref<1x16x128xbf16, #tpu.memory_space<vmem>>, vector<1x16x32xbf16>
    %80 = vector.shape_cast %79 : vector<1x16x32xbf16> to vector<16x32xbf16>
    %c0_59 = arith.constant 0 : index
    %c0_60 = arith.constant 0 : index
    %c64_61 = arith.constant 64 : index
    %81 = vector.load %arg4[%c0_59, %c0_60, %c64_61] : memref<1x16x128xbf16, #tpu.memory_space<vmem>>, vector<1x16x32xbf16>
    %82 = vector.shape_cast %81 : vector<1x16x32xbf16> to vector<16x32xbf16>
    %c0_62 = arith.constant 0 : index
    %c0_63 = arith.constant 0 : index
    %c64_64 = arith.constant 64 : index
    %83 = vector.load %arg5[%c0_62, %c0_63, %c64_64] : memref<1x16x128xbf16, #tpu.memory_space<vmem>>, vector<1x16x32xbf16>
    %84 = vector.shape_cast %83 : vector<1x16x32xbf16> to vector<16x32xbf16>
    %cst_65 = arith.constant dense<0.000000e+00> : vector<16x16xf32>
    %85 = tpu.matmul %80, %82, %cst_65 {dimension_numbers = #tpu.dot_dimension_numbers<[1], [1], [0], [0], [0, 0, 1, 0], [], []>} : vector<16x32xbf16>, vector<16x32xbf16>, vector<16x16xf32> -> vector<16x16xf32>
    %cst_66 = arith.constant 0.176776692 : f32
    %86 = vector.broadcast %cst_66 : f32 to vector<16x16xf32>
    %87 = arith.mulf %85, %86 : vector<16x16xf32>
    %c2 = arith.constant 2 : index
    %c0_67 = arith.constant 0 : index
    %c0_68 = arith.constant 0 : index
    %88 = vector.load %arg7[%c2, %c0_67, %c0_68] : memref<4x16x1xf32, #tpu.memory_space<vmem>>, vector<1x16x1xf32>
    %89 = vector.shape_cast %88 : vector<1x16x1xf32> to vector<16x1xf32>
    %cst_69 = arith.constant dense<0xFF800000> : vector<16xf32>
    %90 = vector.multi_reduction <maximumf>, %87, %cst_69 [1] : vector<16x16xf32> to vector<16xf32>
    %91 = vector.shape_cast %90 : vector<16xf32> to vector<16x1xf32>
    %92 = arith.maximumf %89, %91 : vector<16x1xf32>
    %93 = arith.subf %89, %92 : vector<16x1xf32>
    %94 = math.exp %93 : vector<16x1xf32>
    %95 = vector.broadcast %92 : vector<16x1xf32> to vector<16x16xf32>
    %96 = arith.subf %87, %95 : vector<16x16xf32>
    %97 = math.exp %96 : vector<16x16xf32>
    %c2_70 = arith.constant 2 : index
    %c0_71 = arith.constant 0 : index
    %c0_72 = arith.constant 0 : index
    %98 = vector.load %arg8[%c2_70, %c0_71, %c0_72] : memref<4x16x1xf32, #tpu.memory_space<vmem>>, vector<1x16x1xf32>
    %99 = vector.shape_cast %98 : vector<1x16x1xf32> to vector<16x1xf32>
    %100 = arith.mulf %94, %99 : vector<16x1xf32>
    %cst_73 = arith.constant dense<0.000000e+00> : vector<16xf32>
    %101 = vector.multi_reduction <add>, %97, %cst_73 [1] : vector<16x16xf32> to vector<16xf32>
    %102 = vector.shape_cast %101 : vector<16xf32> to vector<16x1xf32>
    %103 = arith.addf %100, %102 : vector<16x1xf32>
    %c2_74 = arith.constant 2 : index
    %c0_75 = arith.constant 0 : index
    %c0_76 = arith.constant 0 : index
    %104 = vector.load %arg8[%c2_74, %c0_75, %c0_76] : memref<4x16x1xf32, #tpu.memory_space<vmem>>, vector<1x16x1xf32>
    %105 = vector.shape_cast %104 : vector<1x16x1xf32> to vector<16x1xf32>
    %106 = vector.shape_cast %103 : vector<16x1xf32> to vector<1x16x1xf32>
    tpu.vector_store %arg8[%c2_74, %c0_75, %c0_76], %106 {strides = array<i32>} : memref<4x16x1xf32, #tpu.memory_space<vmem>>, vector<1x16x1xf32>,
    %c0_77 = arith.constant 0 : index
    %c64_78 = arith.constant 64 : index
    %107 = vector.load %arg9[%c0_77, %c64_78] : memref<16x128xf32, #tpu.memory_space<vmem>>, vector<16x32xf32>
    %108 = vector.broadcast %94 : vector<16x1xf32> to vector<16x32xf32>
    %109 = arith.mulf %108, %107 : vector<16x32xf32>
    %110 = arith.truncf %97 : vector<16x16xf32> to vector<16x16xbf16>
    %cst_79 = arith.constant dense<0.000000e+00> : vector<16x32xf32>
    %111 = tpu.matmul %110, %84, %cst_79 {dimension_numbers = #tpu.dot_dimension_numbers<[1], [0], [0], [1], [0, 0, 1, 1], [], []>} : vector<16x16xbf16>, vector<16x32xbf16>, vector<16x32xf32> -> vector<16x32xf32>
    %112 = arith.addf %109, %111 : vector<16x32xf32>
    %c0_80 = arith.constant 0 : index
    %c64_81 = arith.constant 64 : index
    %113 = vector.load %arg9[%c0_80, %c64_81] : memref<16x128xf32, #tpu.memory_space<vmem>>, vector<16x32xf32>
    tpu.vector_store %arg9[%c0_80, %c64_81], %112 {strides = array<i32>} : memref<16x128xf32, #tpu.memory_space<vmem>>, vector<16x32xf32>,
    %c2_82 = arith.constant 2 : index
    %c0_83 = arith.constant 0 : index
    %c0_84 = arith.constant 0 : index
    %114 = vector.load %arg7[%c2_82, %c0_83, %c0_84] : memref<4x16x1xf32, #tpu.memory_space<vmem>>, vector<1x16x1xf32>
    %115 = vector.shape_cast %114 : vector<1x16x1xf32> to vector<16x1xf32>
    %116 = vector.shape_cast %92 : vector<16x1xf32> to vector<1x16x1xf32>
    tpu.vector_store %arg7[%c2_82, %c0_83, %c0_84], %116 {strides = array<i32>} : memref<4x16x1xf32, #tpu.memory_space<vmem>>, vector<1x16x1xf32>,
    %c0_85 = arith.constant 0 : index
    %c0_86 = arith.constant 0 : index
    %c96 = arith.constant 96 : index
    %117 = vector.load %arg3[%c0_85, %c0_86, %c96] : memref<1x16x128xbf16, #tpu.memory_space<vmem>>, vector<1x16x32xbf16>
    %118 = vector.shape_cast %117 : vector<1x16x32xbf16> to vector<16x32xbf16>
    %c0_87 = arith.constant 0 : index
    %c0_88 = arith.constant 0 : index
    %c96_89 = arith.constant 96 : index
    %119 = vector.load %arg4[%c0_87, %c0_88, %c96_89] : memref<1x16x128xbf16, #tpu.memory_space<vmem>>, vector<1x16x32xbf16>
    %120 = vector.shape_cast %119 : vector<1x16x32xbf16> to vector<16x32xbf16>
    %c0_90 = arith.constant 0 : index
    %c0_91 = arith.constant 0 : index
    %c96_92 = arith.constant 96 : index
    %121 = vector.load %arg5[%c0_90, %c0_91, %c96_92] : memref<1x16x128xbf16, #tpu.memory_space<vmem>>, vector<1x16x32xbf16>
    %122 = vector.shape_cast %121 : vector<1x16x32xbf16> to vector<16x32xbf16>
    %cst_93 = arith.constant dense<0.000000e+00> : vector<16x16xf32>
    %123 = tpu.matmul %118, %120, %cst_93 {dimension_numbers = #tpu.dot_dimension_numbers<[1], [1], [0], [0], [0, 0, 1, 0], [], []>} : vector<16x32xbf16>, vector<16x32xbf16>, vector<16x16xf32> -> vector<16x16xf32>
    %cst_94 = arith.constant 0.176776692 : f32
    %124 = vector.broadcast %cst_94 : f32 to vector<16x16xf32>
    %125 = arith.mulf %123, %124 : vector<16x16xf32>
    %c3 = arith.constant 3 : index
    %c0_95 = arith.constant 0 : index
    %c0_96 = arith.constant 0 : index
    %126 = vector.load %arg7[%c3, %c0_95, %c0_96] : memref<4x16x1xf32, #tpu.memory_space<vmem>>, vector<1x16x1xf32>
    %127 = vector.shape_cast %126 : vector<1x16x1xf32> to vector<16x1xf32>
    %cst_97 = arith.constant dense<0xFF800000> : vector<16xf32>
    %128 = vector.multi_reduction <maximumf>, %125, %cst_97 [1] : vector<16x16xf32> to vector<16xf32>
    %129 = vector.shape_cast %128 : vector<16xf32> to vector<16x1xf32>
    %130 = arith.maximumf %127, %129 : vector<16x1xf32>
    %131 = arith.subf %127, %130 : vector<16x1xf32>
    %132 = math.exp %131 : vector<16x1xf32>
    %133 = vector.broadcast %130 : vector<16x1xf32> to vector<16x16xf32>
    %134 = arith.subf %125, %133 : vector<16x16xf32>
    %135 = math.exp %134 : vector<16x16xf32>
    %c3_98 = arith.constant 3 : index
    %c0_99 = arith.constant 0 : index
    %c0_100 = arith.constant 0 : index
    %136 = vector.load %arg8[%c3_98, %c0_99, %c0_100] : memref<4x16x1xf32, #tpu.memory_space<vmem>>, vector<1x16x1xf32>
    %137 = vector.shape_cast %136 : vector<1x16x1xf32> to vector<16x1xf32>
    %138 = arith.mulf %132, %137 : vector<16x1xf32>
    %cst_101 = arith.constant dense<0.000000e+00> : vector<16xf32>
    %139 = vector.multi_reduction <add>, %135, %cst_101 [1] : vector<16x16xf32> to vector<16xf32>
    %140 = vector.shape_cast %139 : vector<16xf32> to vector<16x1xf32>
    %141 = arith.addf %138, %140 : vector<16x1xf32>
    %c3_102 = arith.constant 3 : index
    %c0_103 = arith.constant 0 : index
    %c0_104 = arith.constant 0 : index
    %142 = vector.load %arg8[%c3_102, %c0_103, %c0_104] : memref<4x16x1xf32, #tpu.memory_space<vmem>>, vector<1x16x1xf32>
    %143 = vector.shape_cast %142 : vector<1x16x1xf32> to vector<16x1xf32>
    %144 = vector.shape_cast %141 : vector<16x1xf32> to vector<1x16x1xf32>
    tpu.vector_store %arg8[%c3_102, %c0_103, %c0_104], %144 {strides = array<i32>} : memref<4x16x1xf32, #tpu.memory_space<vmem>>, vector<1x16x1xf32>,
    %c0_105 = arith.constant 0 : index
    %c96_106 = arith.constant 96 : index
    %145 = vector.load %arg9[%c0_105, %c96_106] : memref<16x128xf32, #tpu.memory_space<vmem>>, vector<16x32xf32>
    %146 = vector.broadcast %132 : vector<16x1xf32> to vector<16x32xf32>
    %147 = arith.mulf %146, %145 : vector<16x32xf32>
    %148 = arith.truncf %135 : vector<16x16xf32> to vector<16x16xbf16>
    %cst_107 = arith.constant dense<0.000000e+00> : vector<16x32xf32>
    %149 = tpu.matmul %148, %122, %cst_107 {dimension_numbers = #tpu.dot_dimension_numbers<[1], [0], [0], [1], [0, 0, 1, 1], [], []>} : vector<16x16xbf16>, vector<16x32xbf16>, vector<16x32xf32> -> vector<16x32xf32>
    %150 = arith.addf %147, %149 : vector<16x32xf32>
    %c0_108 = arith.constant 0 : index
    %c96_109 = arith.constant 96 : index
    %151 = vector.load %arg9[%c0_108, %c96_109] : memref<16x128xf32, #tpu.memory_space<vmem>>, vector<16x32xf32>
    tpu.vector_store %arg9[%c0_108, %c96_109], %150 {strides = array<i32>} : memref<16x128xf32, #tpu.memory_space<vmem>>, vector<16x32xf32>,
    %c3_110 = arith.constant 3 : index
    %c0_111 = arith.constant 0 : index
    %c0_112 = arith.constant 0 : index
    %152 = vector.load %arg7[%c3_110, %c0_111, %c0_112] : memref<4x16x1xf32, #tpu.memory_space<vmem>>, vector<1x16x1xf32>
    %153 = vector.shape_cast %152 : vector<1x16x1xf32> to vector<16x1xf32>
    %154 = vector.shape_cast %130 : vector<16x1xf32> to vector<1x16x1xf32>
    tpu.vector_store %arg7[%c3_110, %c0_111, %c0_112], %154 {strides = array<i32>} : memref<4x16x1xf32, #tpu.memory_space<vmem>>, vector<1x16x1xf32>,
    %c0_i32_113 = arith.constant 0 : i32
    %155 = arith.cmpi eq, %arg2, %c0_i32_113 : i32
    %156 = arith.extui %155 : i1 to i32
    %c0_i32_114 = arith.constant 0 : i32
    %157 = arith.cmpi ne, %156, %c0_i32_114 : i32
    scf.if %157 {
      %c0_115 = arith.constant 0 : index
      %c0_116 = arith.constant 0 : index
      %158 = vector.load %arg9[%c0_115, %c0_116] : memref<16x128xf32, #tpu.memory_space<vmem>>, vector<16x32xf32>
      %c0_117 = arith.constant 0 : index
      %c0_118 = arith.constant 0 : index
      %c0_119 = arith.constant 0 : index
      %159 = vector.load %arg8[%c0_117, %c0_118, %c0_119] : memref<4x16x1xf32, #tpu.memory_space<vmem>>, vector<1x16x1xf32>
      %160 = vector.shape_cast %159 : vector<1x16x1xf32> to vector<16x1xf32>
      %161 = tpu.reciprocal %160 {approx = true} : vector<16x1xf32> -> vector<16x1xf32>
      %162 = vector.broadcast %161 : vector<16x1xf32> to vector<16x32xf32>
      %163 = arith.mulf %158, %162 : vector<16x32xf32>
      %c0_120 = arith.constant 0 : index
      %c0_121 = arith.constant 0 : index
      %164 = vector.load %arg9[%c0_120, %c0_121] : memref<16x128xf32, #tpu.memory_space<vmem>>, vector<16x32xf32>
      tpu.vector_store %arg9[%c0_120, %c0_121], %163 {strides = array<i32>} : memref<16x128xf32, #tpu.memory_space<vmem>>, vector<16x32xf32>,
      %c0_122 = arith.constant 0 : index
      %c32_123 = arith.constant 32 : index
      %165 = vector.load %arg9[%c0_122, %c32_123] : memref<16x128xf32, #tpu.memory_space<vmem>>, vector<16x32xf32>
      %c1_124 = arith.constant 1 : index
      %c0_125 = arith.constant 0 : index
      %c0_126 = arith.constant 0 : index
      %166 = vector.load %arg8[%c1_124, %c0_125, %c0_126] : memref<4x16x1xf32, #tpu.memory_space<vmem>>, vector<1x16x1xf32>
      %167 = vector.shape_cast %166 : vector<1x16x1xf32> to vector<16x1xf32>
      %168 = tpu.reciprocal %167 {approx = true} : vector<16x1xf32> -> vector<16x1xf32>
      %169 = vector.broadcast %168 : vector<16x1xf32> to vector<16x32xf32>
      %170 = arith.mulf %165, %169 : vector<16x32xf32>
      %c0_127 = arith.constant 0 : index
      %c32_128 = arith.constant 32 : index
      %171 = vector.load %arg9[%c0_127, %c32_128] : memref<16x128xf32, #tpu.memory_space<vmem>>, vector<16x32xf32>
      tpu.vector_store %arg9[%c0_127, %c32_128], %170 {strides = array<i32>} : memref<16x128xf32, #tpu.memory_space<vmem>>, vector<16x32xf32>,
      %c0_129 = arith.constant 0 : index
      %c64_130 = arith.constant 64 : index
      %172 = vector.load %arg9[%c0_129, %c64_130] : memref<16x128xf32, #tpu.memory_space<vmem>>, vector<16x32xf32>
      %c2_131 = arith.constant 2 : index
      %c0_132 = arith.constant 0 : index
      %c0_133 = arith.constant 0 : index
      %173 = vector.load %arg8[%c2_131, %c0_132, %c0_133] : memref<4x16x1xf32, #tpu.memory_space<vmem>>, vector<1x16x1xf32>
      %174 = vector.shape_cast %173 : vector<1x16x1xf32> to vector<16x1xf32>
      %175 = tpu.reciprocal %174 {approx = true} : vector<16x1xf32> -> vector<16x1xf32>
      %176 = vector.broadcast %175 : vector<16x1xf32> to vector<16x32xf32>
      %177 = arith.mulf %172, %176 : vector<16x32xf32>
      %c0_134 = arith.constant 0 : index
      %c64_135 = arith.constant 64 : index
      %178 = vector.load %arg9[%c0_134, %c64_135] : memref<16x128xf32, #tpu.memory_space<vmem>>, vector<16x32xf32>
      tpu.vector_store %arg9[%c0_134, %c64_135], %177 {strides = array<i32>} : memref<16x128xf32, #tpu.memory_space<vmem>>, vector<16x32xf32>,
      %c0_136 = arith.constant 0 : index
      %c96_137 = arith.constant 96 : index
      %179 = vector.load %arg9[%c0_136, %c96_137] : memref<16x128xf32, #tpu.memory_space<vmem>>, vector<16x32xf32>
      %c3_138 = arith.constant 3 : index
      %c0_139 = arith.constant 0 : index
      %c0_140 = arith.constant 0 : index
      %180 = vector.load %arg8[%c3_138, %c0_139, %c0_140] : memref<4x16x1xf32, #tpu.memory_space<vmem>>, vector<1x16x1xf32>
      %181 = vector.shape_cast %180 : vector<1x16x1xf32> to vector<16x1xf32>
      %182 = tpu.reciprocal %181 {approx = true} : vector<16x1xf32> -> vector<16x1xf32>
      %183 = vector.broadcast %182 : vector<16x1xf32> to vector<16x32xf32>
      %184 = arith.mulf %179, %183 : vector<16x32xf32>
      %c0_141 = arith.constant 0 : index
      %c96_142 = arith.constant 96 : index
      %185 = vector.load %arg9[%c0_141, %c96_142] : memref<16x128xf32, #tpu.memory_space<vmem>>, vector<16x32xf32>
      tpu.vector_store %arg9[%c0_141, %c96_142], %184 {strides = array<i32>} : memref<16x128xf32, #tpu.memory_space<vmem>>, vector<16x32xf32>,
      %c0_143 = arith.constant 0 : index
      %c0_144 = arith.constant 0 : index
      %186 = vector.load %arg9[%c0_143, %c0_144] : memref<16x128xf32, #tpu.memory_space<vmem>>, vector<16x128xf32>
      %c0_145 = arith.constant 0 : index
      %c0_146 = arith.constant 0 : index
      %c0_147 = arith.constant 0 : index
      %187 = vector.load %arg6[%c0_145, %c0_146, %c0_147] : memref<1x16x128xf32, #tpu.memory_space<vmem>>, vector<1x16x128xf32>
      %188 = vector.shape_cast %187 : vector<1x16x128xf32> to vector<16x128xf32>
      %189 = vector.shape_cast %186 : vector<16x128xf32> to vector<1x16x128xf32>
      tpu.vector_store %arg6[%c0_145, %c0_146, %c0_147], %189 {strides = array<i32>} : memref<1x16x128xf32, #tpu.memory_space<vmem>>, vector<1x16x128xf32>,
    } else {
    }
    return
  }
  func.func @transform_0(%arg0: i32, %arg1: i32, %arg2: i32) -> (i32, i32, i32) {
    %c0_i32 = arith.constant 0 : i32
    %c0_i32_0 = arith.constant 0 : i32
    return %arg0, %arg1, %c0_i32 : i32, i32, i32
  }
  func.func @transform_1(%arg0: i32, %arg1: i32, %arg2: i32) -> (i32, i32, i32) {
    %c1_i32 = arith.constant 1 : i32
    %c0_i32 = arith.constant 0 : i32
    return %arg0, %arg2, %c1_i32 : i32, i32, i32
  }
  func.func @transform_2(%arg0: i32, %arg1: i32, %arg2: i32) -> (i32, i32, i32) {
    %c2_i32 = arith.constant 2 : i32
    %c0_i32 = arith.constant 0 : i32
    return %arg0, %arg2, %c2_i32 : i32, i32, i32
  }
  func.func @transform_3(%arg0: i32, %arg1: i32, %arg2: i32) -> (i32, i32, i32) {
    %c0_i32 = arith.constant 0 : i32
    %c0_i32_0 = arith.constant 0 : i32
    return %arg0, %arg1, %c0_i32 : i32, i32, i32
  }
}

</mosaic_0001>

<bundles_post_ra>
// kernel: multi_head_self_attention.2
= control target key start
LH: loop header
LB: loop body
LE: loop exit
PB: predicated region body
PF: predicated region fallthrough
CT: control target
= control target key end

     0   :  { %8 = vsyncpa [#allocation3], 0  ;;  %s1021_s0 = inlined_call_operand.hbm [shape: f32[32,128], index: 0, kind: input, shape index: {}]   ;;  %s1022_s1 = inlined_call_operand.hbm [shape: bf16[128,384], index: 1, kind: input, shape index: {}]   ;;  %s1023_s2 = inlined_call_operand.vmem [shape: f32[1,384], index: 2, kind: input, shape index: {}]   ;;  %s1024_s3 = inlined_call_operand.vmem [shape: bf16[32,384], index: 3, kind: output, shape index: {}]  }
   0x1   :  { %9 = vsyncpa [#allocation5], 0 }
   0x2   :  { %11 = vsyncpa [#allocation5 + $0x1], 0  ;;  %s835_s12 = smov 0   ;;  %s837_s13 = smov 0  }
   0x3   :  { %s839_s14 = smov 0   ;;  %s841_s15 = smov 0  }
   0x4   :  { %s843_s16 = smov 0   ;;  %s845_s17 = smov 0  }
   0x5 LB: > { %s542_s18 = sadd.s32 4294967295, %s806_s17   ;;  %p69_p0 = scmp.ne.s32.totalorder %s794_s14, %s790_s13  ;;  %s806_s17 = sphi %s845_s17, %s17_s17   ;;  %s802_s16 = sphi %s843_s16, %s1047_s16   ;;  %s798_s15 = sphi %s841_s15, %s1046_s15   ;;  %s794_s14 = sphi %s839_s14, %s1045_s14   ;;  %s790_s13 = sphi %s837_s13, %s1044_s13   ;;  %s786_s12 = sphi %s835_s12, %s1043_s12  }
   0x6   : > { %p70_p1 = scmp.eq.s32.totalorder %s806_s17, 0  ;;  %p75_p2 = scmp.ne.s32.totalorder %s790_s13, %s786_s12 }
   0x7   : > { %p868_p3 = scmp.eq.s32.totalorder %s542_s18, 0  ;;  %p127_p4 = scmp.eq.s32.totalorder %s542_s18, 2 }
   0x8   : > { %p71_p5 = por %p70_p1, %p69_p0  ;;  %p544_p6 = scmp.ge.s32.totalorder %s806_s17, 1 }
   0x9   : > { %s1030_s19 = scalar_select %p868_p3, 1, 0 }
   0xa   : > { %p875_p7 = por %p868_p3, %p75_p2  ;;  %p879_p8 = por %p127_p4, %p69_p0 }
   0xb   : > { %p140_p9 = scmp.lt.s32.totalorder %s806_s17, 4  ;;  %s808_s23 = smov [#allocation2]  }
   0xc   : > { %s1031_s20 = scalar_select %p875_p7, 1, 0 }
   0xd   : > { %s1032_s21 = scalar_select %p879_p8, 1, 0 }
   0xe   : > { %p884_p10 = pnand %p544_p6, %p140_p9  ;;  %s155_s24 = sshll.u32 %s808_s23, 4  ;;  %s888_s24 = int_to_ptr.vmem [resolvable:$true] %s155_s24 }
   0xf   : > { %p630_p12 = scmp.lt.s32.totalorder %s806_s17, 3  ;;  %s26_s27 = sadd.s32 1, %s802_s16 }
  0x10   : > { %s1033_s22 = scalar_select %p884_p10, 1, 0 }
  0x11   : > { %p621_p11 = pneg %p884_p10  ;;  %p899_p0 = pnand %p630_p12, %p71_p5 }
  0x12   : > { %p904_p1 = scmp.ge.s32.totalorder %s26_s27, 3  ;;  %s694_s4 = scalar_lea.hbm %s1021_s0, 512 }
  0x13   : > { %p895_p13 = pnand %p621_p11, %p868_p3  ;;  %p695_p2 = scmp.ne.s32.totalorder %s1021_s0, %s694_s4 }
  0x14   : > { %s1035_s26 = scalar_select %p899_p0, 1, 0 }
  0x15   : > { %s1036_s28 = scalar_select %p904_p1, 1, 0 }
  0x16   : > { %p696_p4 = pneg %p895_p13  ;;  %p701_p9 = scmp.lt.u32.totalorder %s694_s4, %s1021_s0 }
  0x18   : > { %p697_p6 = pnand %p696_p4, %p695_p2 }
  0x1a   : > { %p698_p5 = pneg %p697_p6 }
  0x1c   : > { %p703_p11 = pnand %p701_p9, %p698_p5 }
  0x1e   : > { %706 = shalt.err (!%p703_p11)
}
  0x1f   : > { %s707_s9 = scalar_lea.vmem %s888_s24, 512  ;;  %p715_p3 = scmp.lt.s32.totalorder %s888_s24, %s888_s24 }
  0x20   : > { %p708_p12 = scmp.ne.s32.totalorder %s888_s24, %s707_s9  ;;  %p716_p10 = scmp.lt.s32.totalorder %s707_s9, %s707_s9 }
  0x22   : > { %p710_p8 = pnand %p708_p12, %p696_p4  ;;  %p717_p0 = por %p716_p10, %p715_p3 }
  0x24   : > { %p711_p7 = pneg %p710_p8 }
  0x26   : > { %p718_p1 = pnand %p717_p0, %p711_p7 }
  0x28   : > { %721 = shalt.err (!%p718_p1)
}
  0x29   : > { %s809_s10 = smov 128   ;;  %s810_s11 = smov 8  }
  0x2a   : > { %624 = dma.hbm_to_vmem [thread:$0]  (!%p895_p13), %s1021_s0, 512, %s888_s24, [#allocation3], %s809_s10, %s809_s10, %s810_s11  }
  0x2b   : > { %s62_s23 = sadd.s32 1, %s794_s14  ;;  %p1037_p3 = scmp.ne.s32.totalorder %s1036_s28, 0 }
  0x2c   : > { %s169_s29 = sand.u32 1, %s794_s14   ;;  %s548_s30 = sshll.u32 %s802_s16, 6 }
  0x2d   : > { %s1049_s27 = smov (%p1037_p3, %s26_s27), 0  ;;  %s547_s5 = sshll.u32 %s169_s29, 6 }
  0x2e   : > { %s59_s4 = ssub.s32 %s802_s16, %s1049_s27  ;;  %s941_s25 = scalar_lea.hbm %s1022_s1, %s548_s30 }
  0x2f   : > { %p60_p7 = scmp.eq.s32.totalorder %s59_s4, 0  ;;  %s173_s28 = scalar_lea.vmem [#allocation4], %s547_s5 }
  0x30   : > { %s179_s8 = sshll.u32 %s173_s28, 4  ;;  %s948_s9 = scalar_lea.sflag [#allocation5], %s169_s29  ;;  %s946_s8 = int_to_ptr.vmem [resolvable:$true] %s179_s8 }
  0x31   : > { %s944_s24 = scalar_select %p60_p7, %s794_s14, %s62_s23  }
  0x32   : > { %s722_s10 = scalar_lea.hbm %s941_s25, 1024  ;;  %p1038_p10 = scmp.ne.s32.totalorder %s1035_s26, 0 }
  0x33   : > { %p723_p8 = scmp.ne.s32.totalorder %s941_s25, %s722_s10  ;;  %s727_s18 = scalar_lea.hbm %s1022_s1, 3072 }
  0x34   : > { %p724_p13 = pneg %p1038_p10  ;;  %p728_p2 = scmp.lt.u32.totalorder %s941_s25, %s1022_s1 }
  0x35   : > { %p729_p4 = scmp.lt.u32.totalorder %s727_s18, %s722_s10  ;;  %p731_p5 = scmp.lt.u32.totalorder %s722_s10, %s941_s25 }
  0x36   : > { %p725_p0 = pnand %p724_p13, %p723_p8 }
  0x37   : > { %p730_p6 = por %p729_p4, %p728_p2 }
  0x38   : > { %p726_p1 = pneg %p725_p0 }
  0x39   : > { %p732_p9 = por %p731_p5, %p730_p6 }
  0x3b   : > { %p733_p11 = pnand %p732_p9, %p726_p1 }
  0x3d   : > { %736 = shalt.err (!%p733_p11)
}
  0x3e   : > { %s737_s29 = scalar_lea.vmem %s946_s8, 1024  ;;  %s811_s4 = smov [#allocation4]  }
  0x3f   : > { %p738_p12 = scmp.ne.s32.totalorder %s946_s8, %s737_s29  ;;  %s742_s5 = sshll.u32 %s811_s4, 4  ;;  %s743_s5 = int_to_ptr.vmem [resolvable:$false] %s742_s5 }
  0x40   : > { %s744_s6 = scalar_lea.vmem %s743_s5, 2048  ;;  %p745_p8 = scmp.lt.s32.totalorder %s946_s8, %s743_s5 }
  0x41   : > { %p740_p3 = pnand %p738_p12, %p724_p13  ;;  %p746_p0 = scmp.lt.s32.totalorder %s744_s6, %s737_s29 }
  0x43   : > { %p741_p7 = pneg %p740_p3  ;;  %p747_p2 = por %p746_p0, %p745_p8 }
  0x45   : > { %p748_p4 = pnand %p747_p2, %p741_p7 }
  0x47   : > { %751 = shalt.err (!%p748_p4)
}
  0x48   : > { %s812_s7 = smov 192   ;;  %s813_s28 = smov 64  }
  0x49   : > { %s814_s10 = smov 4   ;;  %p1039_p13 = scmp.ne.s32.totalorder %s1033_s22, 0 }
  0x4a   : > { %628 = dma.hbm_to_vmem [thread:$0]  (!%p1038_p10), %s941_s25, 1024, %s946_s8, %s948_s9, %s812_s7, %s813_s28, %s814_s10  }
  0x4b   : > { %197 = sbr.rel (%p1039_p13) target bundleno = 349 (0x15d), region = 32  ;;  %p1040_p1 = scmp.ne.s32.totalorder (!%p1039_p13), %s1030_s19, 0 }
  0x52   : > { %777 = dma.done.wait (%p1040_p1), [#allocation3], 512  }
  0x53   : > { %779 = vsyncadd (%p1040_p1), [#allocation3], 4294966784  ;;  %s983_s11 = sand.u32 1, %s790_s13   ;;  %p1041_p6 = scmp.ne.s32.totalorder %s1031_s20, 0 }
  0x54   : > { %s551_s12 = sshll.u32 %s983_s11, 6  ;;  %s204_s18 = scalar_lea.sflag [#allocation5], %s983_s11 }
  0x55   : > { %s207_s23 = scalar_lea.vmem [#allocation4], %s551_s12 }
  0x56   : > { %781 = dma.done.wait (%p1041_p6), %s204_s18, 1024  }
  0x57   : > { %783 = vsyncadd (%p1041_p6), %s204_s18, 4294966272  ;;  %v686_v0 = vld [vmem:[%s207_s23] sm:$0xff]   ;;  %v687_v1 = vld [vmem:[%s207_s23 + $0x8] sm:$0xff]   ;;  %p233_p10 = scmp.lt.s32.totalorder %s798_s15, 2  ;;  %s552_s25 = sshll.u32 %s983_s11, 4 }
  0x58   : > { %595 = vmatprep.subr.bf16.mxu0 %v686_v0  ;;  %v688_v2 = vld [vmem:[%s207_s23 + $0x10] sm:$0xff]   ;;  %v689_v3 = vld [vmem:[%s207_s23 + $0x18] sm:$0xff]   ;;  %v238_v4 = vld [vmem:[#allocation2] sm:$0xff]  ;;  %s231_s8 = scalar_lea.vmem [#allocation6], %s552_s25  ;;  %p1042_p5 = scmp.ne.s32.totalorder %s1032_s21, 0 }
  0x59   : > { %596 = vmatpush3.bf16.msra.mxu0 %v686_v0  ;;  %v239_v5 = vld [vmem:[#allocation2 + $0x8] sm:$0xff]  ;;  %v690_v7 = vld [vmem:[%s207_s23 + $0x20] sm:$0xff]   ;;  %v692_v9 = vld [vmem:[%s207_s23 + $0x30] sm:$0xff]   ;;  %s234_s19 = scalar_select %p233_p10, %s798_s15, 2 }
  0x5a   : > { %597 = vmatprep.subr.bf16.mxu0 %v687_v1  ;;  %v242_v6 = vpack.c.bf16 %v239_v5, %v238_v4  ;;  %v691_v8 = vld [vmem:[%s207_s23 + $0x28] sm:$0xff]   ;;  %v693_v10 = vld [vmem:[%s207_s23 + $0x38] sm:$0xff]   ;;  %v240_v11 = vld [vmem:[#allocation2 + $0x10] sm:$0xff]  ;;  %s567_s9 = sshll.u32 (%p1042_p5), %s798_s15, 2 }
  0x5b   : > { %v241_v12 = vld [vmem:[#allocation2 + $0x18] sm:$0xff]  ;;  %s235_s26 = scalar_lea.vmem %s1023_s2, %s234_s19  ;;  %s395_s4 = scalar_lea.vmem (%p1042_p5), %s1024_s3, %s567_s9 }
  0x5c   : > { %611 = vmatprep.mubr.bf16.mxu0 %v242_v6  ;;  %v243_v13 = vpack.c.bf16 %v241_v12, %v240_v11  ;;  %v553_v15 = vld [vmem:[%s235_s26] ss:$0 sm:$0xff] }
  0x5d   : > { %598 = vmatpush3.bf16.msra.mxu0 %v687_v1 }
  0x5e   : > { %599 = vmatprep.subr.bf16.mxu0 %v688_v2 }
  0x61   : > { %600 = vmatpush3.bf16.msra.mxu0 %v688_v2 }
  0x62   : > { %601 = vmatprep.subr.bf16.mxu0 %v689_v3 }
  0x65   : > { %602 = vmatpush3.bf16.msra.mxu0 %v689_v3 }
  0x66   : > { %603 = vmatprep.subr.bf16.mxu0 %v690_v7 }
  0x69   : > { %604 = vmatpush3.bf16.msra.mxu0 %v690_v7 }
  0x6a   : > { %605 = vmatprep.subr.bf16.mxu0 %v691_v8 }
  0x6d   : > { %606 = vmatpush3.bf16.msra.mxu0 %v691_v8 }
  0x6e   : > { %607 = vmatprep.subr.bf16.mxu0 %v692_v9 }
  0x71   : > { %608 = vmatpush3.bf16.msra.mxu0 %v692_v9 }
  0x72   : > { %609 = vmatprep.subr.bf16.mxu0 %v693_v10 }
  0x75   : > { %610 = vmatpush3.bf16.msra.mxu0 %v693_v10 }
  0x78   : > { %612 = vmatmul.mubr.bf16.vlgmr.msra.gmra.mrb[0].mxu0 %v243_v13 }
 0x14b   : > { %v613_v14 = vpop.f32.mrb[0].mxu0 }
 0x14c   : > { %v349_v16 = vpop.f32.mrb[1].mxu0  ;;  %v358_v18 = vadd.f32 %v613_v14, %v553_v15 }
 0x14d   : > { %v614_v17 = vpop.f32.mrb[2].mxu0  ;;  %v350_v21 = vadd.f32 %v553_v15, %v349_v16  ;;  %390 = sbr.rel (!%p1042_p5) target bundleno = 349 (0x15d), region = 44 }
 0x14e   : > { %v361_v19 = vadd.f32 %v614_v17, %v553_v15  ;;  %v352_v20 = vpop.f32.mrb[3].mxu0 }
 0x14f   : > { %v353_v22 = vadd.f32 %v553_v15, %v352_v20 }
 0x150   : > { %v582_v23 = vpack.c.bf16 %v361_v19, %v358_v18 }
 0x151   : > { %v577_v24 = vpack.c.bf16 %v353_v22, %v350_v21 }
 0x152   : > { %584 = vst [vmem:[%s231_s8 + $0x8] sm:$0xff] %v582_v23  }
 0x153   : > { %578 = vst [vmem:[%s231_s8] sm:$0xff] %v577_v24  }
 0x159   : > { %v415_v27 = vld [vmem:[%s231_s8 + $0x8] sm:$0xf]  ;;  %v417_v28 = vld [vmem:[%s231_s8 + $0xc] sm:$0xf] }
 0x15a   : > { %v411_v25 = vld [vmem:[%s231_s8] sm:$0xf]  ;;  %v413_v26 = vld [vmem:[%s231_s8 + $0x4] sm:$0xf]  ;;  %416 = vst [vmem:[%s395_s4 + $0x18] sm:$0xf] %v415_v27 }
 0x15b   : > { %412 = vst [vmem:[%s395_s4] sm:$0xf] %v411_v25  ;;  %414 = vst [vmem:[%s395_s4 + $0xc] sm:$0xf] %v413_v26 }
 0x15c   : > { %418 = vst [vmem:[%s395_s4 + $0x24] sm:$0xf] %v417_v28 }
 0x15d PF: > { %s17_s17 = sadd.s32 1, %s806_s17   ;;  %s1043_s12 = smov %s790_s13 }
 0x15e   : > { %p14_p9 = scmp.ge.s32.totalorder %s17_s17, 5   ;;  %s1044_s13 = smov %s794_s14 }
 0x15f   : > { %s1045_s14 = smov %s944_s24  ;;  %s1046_s15 = smov %s802_s16 }
 0x160   : > { %s1047_s16 = smov %s1049_s27  ;;  %16 = sbr.rel (!%p14_p9) target bundleno = 5 (0x5), region = 122 }
 0x167   :  { %459 = vsyncpa [#allocation3], 1 }
 0x168   :  { %461 = vsyncpa [#allocation3 + $0x1], 1 }
 0x169   :  { %462 = vsyncpa [#allocation5], 1 }
 0x16a   :  { %464 = vsyncpa [#allocation5 + $0x1], 1 }

// kernel: multi_head_self_attention.3
= control target key start
LH: loop header
LB: loop body
LE: loop exit
PB: predicated region body
PF: predicated region fallthrough
CT: control target
= control target key end

     0   :  { %8 = vsyncpa [#allocation9], 0  ;;  %s2217_s0 = inlined_call_operand.vmem [shape: bf16[2,16,384], index: 0, kind: input, shape index: {}, may-alias: {0,1,2}]   ;;  %s2218_s1 = inlined_call_operand.vmem [shape: bf16[2,16,384], index: 1, kind: input, shape index: {}, may-alias: {0,1,2}]   ;;  %s2219_s2 = inlined_call_operand.vmem [shape: bf16[2,16,384], index: 2, kind: input, shape index: {}, may-alias: {0,1,2}]   ;;  %s2220_s3 = inlined_call_operand.hbm [shape: f32[2,16,128], index: 3, kind: output, shape index: {}]  }
   0x1   :  { %10 = vsyncpa [#allocation9 + $0x1], 0  ;;  %s1773_s12 = smov 0   ;;  %s1775_s13 = smov 0  }
   0x2   :  { %s1777_s14 = smov 0   ;;  %s1779_s15 = smov 0  }
   0x3   :  { %s1781_s16 = smov 0   ;;  %s1783_s17 = smov 0  }
   0x4 LB: > { %s1427_s18 = sadd.s32 4294967295, %s1741_s17   ;;  %s1428_s19 = sadd.s32 4294967294, %s1741_s17   ;;  %s1741_s17 = sphi %s1783_s17, %s16_s17   ;;  %s1737_s16 = sphi %s1781_s16, %s2228_s16   ;;  %s1733_s15 = sphi %s1779_s15, %s2227_s15   ;;  %s1729_s14 = sphi %s1777_s14, %s2226_s14   ;;  %s1725_s13 = sphi %s1775_s13, %s2225_s13   ;;  %s1721_s12 = sphi %s1773_s12, %s2224_s12  }
   0x5   : > { %s35_s20 = sadd.s32 1, %s1737_s16  ;;  %s44_s21 = sadd.s32 1, %s1729_s14 }
   0x6   : > { %p37_p0 = scmp.ge.s32.totalorder %s35_s20, 2  ;;  %p51_p1 = scmp.ne.s32.totalorder %s1729_s14, %s1725_s13 }
   0x7   : > { %p52_p2 = scmp.eq.s32.totalorder %s1741_s17, 0  ;;  %p139_p3 = scmp.eq.s32.totalorder %s1427_s18, 1 }
   0x8   : > { %s2230_s20 = smov (%p37_p0, %s35_s20), 0  ;;  %p144_p6 = scmp.ne.s32.totalorder %s1725_s13, %s1721_s12 }
   0x9   : > { %p1812_p4 = por %p52_p2, %p51_p1  ;;  %p1816_p5 = por %p139_p3, %p51_p1 }
   0xa   : > { %s39_s24 = ssub.s32 %s1737_s16, %s2230_s20  ;;  %p145_p8 = scmp.eq.s32.totalorder %s1428_s19, 1 }
   0xb   : > { %p42_p7 = scmp.eq.s32.totalorder %s39_s24, 0  ;;  %p1430_p10 = scmp.ge.s32.totalorder %s1741_s17, 2 }
   0xc   : > { %p1827_p9 = por %p145_p8, %p144_p6 }
   0xd   : > { %s1825_s25 = scalar_select %p42_p7, %s1729_s14, %s44_s21  }
   0xe   : > { %161 = sbr.rel (%p1430_p10) target bundleno = 42 (0x2a), region = 16 }
  0x15   : > { %164 = sbr.rel (!%p1812_p4) target bundleno = 28 (0x1c), region = 20  ;;  %s166_s27 = sand.u32 (%p1812_p4), 1, %s1729_s14  }
  0x16   : > { %s1536_s28 = smul.u32 (%p1812_p4), 24, %s1737_s16  ;;  %s1431_s29 = sshll.u32 (%p1812_p4), %s166_s27, 3 }
  0x17   : > { %s168_s6 = scalar_lea.vmem (%p1812_p4), [#allocation5], %s1431_s29 }
  0x18   : > { %s174_s5 = scalar_lea.vmem (%p1812_p4), %s2217_s0, %s1536_s28 }
  0x19   : > { %v190_v0 = vld [vmem:[%s174_s5] sm:$0xf] (%p1812_p4)  ;;  %v192_v1 = vld [vmem:[%s174_s5 + $0xc] sm:$0xf] (%p1812_p4) }
  0x1a   : > { %191 = vst [vmem:[%s168_s6] sm:$0xf] (%p1812_p4), %v190_v0  ;;  %193 = vst [vmem:[%s168_s6 + $0x4] sm:$0xf] (%p1812_p4), %v192_v1 }
  0x1c PF: > { %220 = sbr.rel (!%p1812_p4) target bundleno = 35 (0x23), region = 61  ;;  %s222_s7 = sand.u32 (%p1812_p4), 1, %s1729_s14  }
  0x1d   : > { %s1434_s8 = smul.u32 (%p1812_p4), 24, %s1737_s16  ;;  %s1433_s9 = sshll.u32 (%p1812_p4), %s222_s7, 3 }
  0x1e   : > { %s224_s19 = scalar_lea.vmem (%p1812_p4), [#allocation6], %s1433_s9 }
  0x1f   : > { %s1335_s18 = scalar_lea.vmem (%p1812_p4), %s2218_s1, %s1434_s8 }
  0x20   : > { %v1435_v2 = vld [vmem:[%s1335_s18 + $0x4] sm:$0xf] (%p1812_p4)  ;;  %v1436_v3 = vld [vmem:[%s1335_s18 + $0x10] sm:$0xf] (%p1812_p4) }
  0x21   : > { %248 = vst [vmem:[%s224_s19] sm:$0xf] (%p1812_p4), %v1435_v2  ;;  %250 = vst [vmem:[%s224_s19 + $0x4] sm:$0xf] (%p1812_p4), %v1436_v3 }
  0x23 PF: > { %277 = sbr.rel (!%p1812_p4) target bundleno = 42 (0x2a), region = 102  ;;  %s279_s21 = sand.u32 (%p1812_p4), 1, %s1729_s14  }
  0x24   : > { %s1438_s24 = smul.u32 (%p1812_p4), 24, %s1737_s16  ;;  %s1437_s27 = sshll.u32 (%p1812_p4), %s279_s21, 3 }
  0x25   : > { %s281_s4 = scalar_lea.vmem (%p1812_p4), [#allocation7], %s1437_s27 }
  0x26   : > { %s1343_s30 = scalar_lea.vmem (%p1812_p4), %s2219_s2, %s1438_s24 }
  0x27   : > { %v1439_v4 = vld [vmem:[%s1343_s30 + $0x8] sm:$0xf] (%p1812_p4)  ;;  %v1440_v5 = vld [vmem:[%s1343_s30 + $0x14] sm:$0xf] (%p1812_p4) }
  0x28   : > { %305 = vst [vmem:[%s281_s4] sm:$0xf] (%p1812_p4), %v1439_v4  ;;  %307 = vst [vmem:[%s281_s4 + $0x4] sm:$0xf] (%p1812_p4), %v1440_v5 }
  0x2a PF: > { %p1441_p11 = scmp.ge.s32.totalorder %s1741_s17, 1  ;;  %p333_p12 = scmp.lt.s32.totalorder %s1741_s17, 3 }
  0x2c   : > { %p334_p13 = pnand %p1441_p11, %p333_p12 }
  0x2d   : > { %s1858_s22 = sand.u32 (!%p334_p13), 1, %s1725_s13   ;;  %v1743_v6 = vmov (!%p334_p13), 0.0   ;;  %vm1744_vm0 = vmmov (!%p334_p13), 0   ;;  %vm429_vm1 = vcmask (!%p334_p13), 261120   ;;  %vm394_vm2 = vcmask (!%p334_p13), 7168   ;;  %s1747_s8 = smov (!%p334_p13), 96  }
  0x2e   : > { %337 = sbr.rel (%p334_p13) target bundleno = 1647 (0x66f), region = 143  ;;  %1488 = vmatprep.subr.bf16.mxu0 (!%p334_p13), %v1743_v6  ;;  %411 = vst [vmem:[#allocation4] sm:$0xff] (!%p334_p13), %v1743_v6  ;;  %412 = vst [vmem:[#allocation4 + $0x8] sm:$0xff] (!%p334_p13), %v1743_v6  ;;  %s1864_s5 = sshll.u32 (!%p334_p13), %s1858_s22, 3  ;;  %1490 = vmatprep.mubr.msk.bf16.mxu0 (!%p334_p13), %vm1744_vm0, %v1743_v6  ;;  %v1745_v10 = vmov (!%p334_p13), -inf   ;;  %vm481_vm3 = vcmask (!%p334_p13), 130048  }
  0x2f   : > { %1494 = vmatprep.subr.bf16.mxu1 (!%p334_p13), %v1743_v6  ;;  %1496 = vmatprep.mubr.msk.bf16.mxu1 (!%p334_p13), %vm1744_vm0, %v1743_v6  ;;  %s1872_s6 = scalar_lea.vmem (!%p334_p13), [#allocation6], %s1864_s5  ;;  %s1876_s7 = scalar_lea.vmem (!%p334_p13), [#allocation5], %s1864_s5  ;;  %395 = vst.msk [vmem:[#allocation2] sm:$0xff] (!%p334_p13), %vm394_vm2, %v1745_v10  ;;  %396 = vst.msk [vmem:[#allocation2 + $0x8] sm:$0xff] (!%p334_p13), %vm394_vm2, %v1745_v10  ;;  %v1746_v19 = vmov (!%p334_p13), 0   ;;  %vm792_vm4 = vcmask (!%p334_p13), 523520  }
  0x30   : > { %v1603_v7 = vld [vmem:[%s1872_s6] sm:$0xff] (!%p334_p13)   ;;  %v1604_v9 = vld [vmem:[%s1876_s7] sm:$0xff] (!%p334_p13)   ;;  %397 = vst.msk [vmem:[#allocation2 + $0x10] sm:$0xff] (!%p334_p13), %vm394_vm2, %v1745_v10  ;;  %398 = vst.msk [vmem:[#allocation2 + $0x18] sm:$0xff] (!%p334_p13), %vm394_vm2, %v1745_v10  ;;  %1601 = vset.pattern.permute.xlu1 (!%p334_p13), %v1746_v19  ;;  %1602 = vset.pattern.permute.xlu0 (!%p334_p13), %v1746_v19  ;;  %s1936_s9 = scalar_lea.vmem (!%p334_p13), [#allocation7], %s1864_s5  ;;  %s1748_s10 = smov (!%p334_p13), 64  }
  0x31   : > { %v434_v8 = vsel (!%p334_p13), %vm429_vm1, %v1603_v7, 0  ;;  %399 = vst.msk [vmem:[#allocation2 + $0x20] sm:$0xff] (!%p334_p13), %vm394_vm2, %v1745_v10  ;;  %400 = vst.msk [vmem:[#allocation2 + $0x28] sm:$0xff] (!%p334_p13), %vm394_vm2, %v1745_v10  ;;  %v1605_v20 = vld [vmem:[%s1872_s6] sm:$0xff] (!%p334_p13)   ;;  %v1606_v29 = vld [vmem:[%s1876_s7] sm:$0xff] (!%p334_p13)   ;;  %s1749_s11 = smov (!%p334_p13), 32  }
  0x32   : > { %1489 = vmatpush3.bf16.xpose.msra.mxu0 (!%p334_p13), %v434_v8  ;;  %401 = vst.msk [vmem:[#allocation2 + $0x30] sm:$0xff] (!%p334_p13), %vm394_vm2, %v1745_v10  ;;  %402 = vst.msk [vmem:[#allocation2 + $0x38] sm:$0xff] (!%p334_p13), %vm394_vm2, %v1745_v10  ;;  %v1607_v30 = vld [vmem:[%s1872_s6] sm:$0xff] (!%p334_p13)   ;;  %v1611_v31 = vld [vmem:[%s1936_s9] sm:$0xff] (!%p334_p13)   ;;  %vm991_vm5 = vcmask (!%p334_p13), 785920   ;;  %vm1190_vm6 = vcmask (!%p334_p13), 1048320  }
  0x33   : > { %1506 = vmatprep.subr.bf16.mxu0 (!%p334_p13), %v1743_v6  ;;  %403 = vst.msk [vmem:[#allocation3] sm:$0xff] (!%p334_p13), %vm394_vm2, %v1743_v6  ;;  %404 = vst.msk [vmem:[#allocation3 + $0x8] sm:$0xff] (!%p334_p13), %vm394_vm2, %v1743_v6  ;;  %1495 = vmatpush3.bf16.msra.mxu1 (!%p334_p13), %v1611_v31  ;;  %v1608_v32 = vld [vmem:[%s1876_s7] sm:$0xff] (!%p334_p13)   ;;  %v1609_v33 = vld [vmem:[%s1872_s6] sm:$0xff] (!%p334_p13)   ;;  %s1445_s18 = sshll.u32 (!%p334_p13), %s1858_s22, 4  ;;  %s1471_s19 = sshll.u32 (!%p334_p13), %s1733_s15, 8 }
  0x34   : > { %405 = vst.msk [vmem:[#allocation3 + $0x10] sm:$0xff] (!%p334_p13), %vm394_vm2, %v1743_v6  ;;  %406 = vst.msk [vmem:[#allocation3 + $0x18] sm:$0xff] (!%p334_p13), %vm394_vm2, %v1743_v6  ;;  %1500 = vmatprep.subr.bf16.mxu1 (!%p334_p13), %v1743_v6  ;;  %v1610_v34 = vld [vmem:[%s1876_s7] sm:$0xff] (!%p334_p13)   ;;  %s384_s21 = scalar_lea.vmem (!%p334_p13), [#allocation8], %s1445_s18  ;;  %s2166_s29 = scalar_lea.hbm (!%p334_p13), %s2220_s3, %s1471_s19 }
  0x35   : > { %407 = vst.msk [vmem:[#allocation3 + $0x20] sm:$0xff] %vm394_vm2, %v1743_v6  ;;  %408 = vst.msk [vmem:[#allocation3 + $0x28] sm:$0xff] %vm394_vm2, %v1743_v6  ;;  %v1612_v31 = vld [vmem:[%s1936_s9] sm:$0xff]   ;;  %s1298_s24 = sshll.u32 %s384_s21, 4  ;;  %s1283_s30 = scalar_lea.sflag [#allocation9], %s1858_s22  ;;  %s2168_s24 = int_to_ptr.vmem [resolvable:$true] %s1298_s24 }
  0x36   : > { %409 = vst.msk [vmem:[#allocation3 + $0x30] sm:$0xff] %vm394_vm2, %v1743_v6  ;;  %410 = vst.msk [vmem:[#allocation3 + $0x38] sm:$0xff] %vm394_vm2, %v1743_v6  ;;  %v1912_v21 = vld [vmem:[#allocation2] sm:$0xff]  ;;  %v1917_v24 = vld [vmem:[#allocation2 + $0x8] sm:$0xff]  ;;  %s1663_s4 = scalar_lea.vmem %s2168_s24, 256  ;;  %s1750_s15 = smov [#allocation8]  }
  0x37   : > { %p1664_p0 = scmp.ne.s32.totalorder %s2168_s24, %s1663_s4  ;;  %s1667_s5 = sshll.u32 %s1750_s15, 4  ;;  %s1668_s5 = int_to_ptr.vmem [resolvable:$false] %s1667_s5 }
  0x38   : > { %s1669_s6 = scalar_lea.vmem %s1668_s5, 512  ;;  %p1670_p3 = scmp.lt.s32.totalorder %s2168_s24, %s1668_s5 }
  0x39   : > { %1491 = vmatmul.mubr.msk.bf16.vlgmr.msra.gmra.mrb[0].mxu0 %vm429_vm1, %v1604_v9  ;;  %p1665_p1 = pnand %p1664_p0, %p1816_p5  ;;  %p1671_p4 = scmp.lt.s32.totalorder %s1669_s6, %s1663_s4 }
  0x3a   : > { %1508 = vmatprep.mubr.msk.bf16.mxu0 %vm1744_vm0, %v1743_v6 }
  0x3b   : > { %p1666_p2 = pneg %p1665_p1  ;;  %p1672_p6 = por %p1671_p4, %p1670_p3 }
  0x3d   : > { %p1673_p7 = pnand %p1672_p6, %p1666_p2 }
 0x10c   : > { %v470_v11 = vpop.f32.mrb[0].mxu0 }
 0x10d   : > { %v477_v12 = vmul.f32 0.17677669, %v470_v11  ;;  %v1492_v13 = vpop.f32.mrb[1].mxu0 }
 0x10e   : > { %v473_v14 = vpop.f32.mrb[2].mxu0 }
 0x10f   : > { %v478_v15 = vmul.f32 0.17677669, %v473_v14  ;;  %v1493_v16 = vpop.f32.mrb[3].mxu0  ;;  %v482_v17 = vsel %vm481_vm3, %v477_v12, -inf }
 0x110   : > { %483 = vmax.xlane.f32.xlu0 %v482_v17 }
 0x111   : > { %v485_v18 = vsel %vm481_vm3, %v478_v15, -inf }
 0x114   : > { %486 = vmax.xlane.f32.xlu0 %v485_v18  ;;  %v1996_v18 = vld [vmem:[#allocation2 + $0x10] sm:$0xff] }
 0x12a   : > { %616 = vrot.lane.b32.xlu0 %v1605_v20, %s1747_s8  ;;  %v1998_v20 = vld [vmem:[#allocation2 + $0x18] sm:$0xff] }
 0x19d   : > { %v484_v22 = vpop.xlane.xlu0 %483 }
 0x19e   : > { %v1915_v23 = vmax.f32 %v1912_v21, %v484_v22 }
 0x1a0   : > { %v490_v25 = vsub.f32 %v1912_v21, %v1915_v23  ;;  %596 = vst.msk [vmem:[#allocation2] sm:$0xff] %vm394_vm2, %v1915_v23  ;;  %498 = vperm.xlu1 %1601, %v1915_v23  }
 0x1a1   : > { %v487_v26 = vpop.xlane.xlu0 %486 }
 0x1a2   : > { %v1925_v27 = vmax.f32 %v1917_v24, %v487_v26 }
 0x1a4   : > { %v491_v28 = vsub.f32 %v1917_v24, %v1925_v27  ;;  %597 = vst.msk [vmem:[#allocation2 + $0x8] sm:$0xff] %vm394_vm2, %v1925_v27  ;;  %503 = vperm.xlu1 %1601, %v1925_v27  }
 0x1a5   : > { %v617_v41 = vpop.permute.xlu0 %616 }
 0x1a6   : > { %v622_v45 = vsel %vm429_vm1, %v617_v41, 0  ;;  %v2037_v41 = vld [vmem:[#allocation2 + $0x30] sm:$0xff] }
 0x1a8   : > { %609 = vrot.lane.b32.xlu1 %v1606_v29, %s1747_s8 }
 0x1ac   : > { %815 = vrot.lane.b32.xlu1 %v1607_v30, %s1748_s10 }
 0x1b0   : > { %808 = vrot.lane.b32.xlu1 %v1608_v32, %s1748_s10 }
 0x1b4   : > { %1014 = vrot.lane.b32.xlu1 %v1609_v33, %s1749_s11  ;;  %v2017_v33 = vld [vmem:[#allocation2 + $0x20] sm:$0xff] }
 0x1b8   : > { %1007 = vrot.lane.b32.xlu1 %v1610_v34, %s1749_s11 }
 0x21f   : > { %v499_v35 = vpop.permute.xlu1 %498 }
 0x220   : > { %v506_v36 = vsub.f32 %v477_v12, %v499_v35  ;;  %v2020_v35 = vld [vmem:[#allocation2 + $0x28] sm:$0xff] }
 0x222   : > { %v508_v37 = vmul.f32 1.442695, %v506_v36 }
 0x223   : > { %v504_v38 = vpop.permute.xlu1 %503 }
 0x224   : > { %v507_v39 = vsub.f32 %v478_v15, %v504_v38  ;;  %1615 = vpow2.f32 %v508_v37 }
 0x226   : > { %v510_v40 = vmul.f32 1.442695, %v507_v39 }
 0x227   : > { %v610_v42 = vpop.permute.xlu1 %609 }
 0x228   : > { %1617 = vpow2.f32 %v510_v40 }
 0x22b   : > { %v816_v47 = vpop.permute.xlu1 %815 }
 0x22c   : > { %v821_v49 = vsel %vm429_vm1, %v816_v47, 0 }
 0x22e   : > { %v1947_v43 = vpop.eup %1615 }
 0x22f   : > { %v809_v48 = vpop.permute.xlu1 %808 }
 0x232   : > { %v1949_v44 = vpop.eup %1617 }
 0x233   : > { %v541_v46 = vpack.c.bf16 %v1949_v44, %v1947_v43  ;;  %v1015_v50 = vpop.permute.xlu1 %1014 }
 0x234   : > { %v1020_v51 = vsel %vm429_vm1, %v1015_v50, 0 }
 0x235   : > { %1497 = vmatmul.mubr.msk.bf16.vlgmr.msra.gmra.mrb[0].mxu1 %vm481_vm3, %v541_v46  ;;  %v2041_v46 = vld [vmem:[#allocation2 + $0x38] sm:$0xff] }
 0x236   : > { %1501 = vmatpush3.bf16.xpose.msra.mxu1 %v622_v45  ;;  %1502 = vmatprep.mubr.msk.bf16.mxu1 %vm1744_vm0, %v1743_v6 }
 0x237   : > { %1512 = vmatprep.subr.bf16.mxu1 %v1743_v6  ;;  %v1008_v52 = vpop.permute.xlu1 %1007 }
 0x23d   : > { %1503 = vmatmul.mubr.msk.bf16.vlgmr.msra.gmra.mrb[4].mxu1 %vm429_vm1, %v610_v42  ;;  %v1613_v42 = vld [vmem:[%s1936_s9] sm:$0xff]  }
 0x23e   : > { %1513 = vmatpush3.bf16.xpose.msra.mxu1 %v821_v49  ;;  %1514 = vmatprep.mubr.msk.bf16.mxu1 %vm1744_vm0, %v1743_v6 }
 0x23f   : > { %1524 = vmatprep.subr.bf16.mxu1 %v1743_v6 }
 0x245   : > { %1515 = vmatmul.mubr.msk.bf16.vlgmr.msra.gmra.mrb[8].mxu1 %vm429_vm1, %v809_v48 }
 0x246   : > { %1525 = vmatpush3.bf16.xpose.msra.mxu1 %v1020_v51  ;;  %1526 = vmatprep.mubr.msk.bf16.mxu1 %vm1744_vm0, %v1743_v6 }
 0x24d   : > { %1527 = vmatmul.mubr.msk.bf16.vlgmr.msra.gmra.mrb[12].mxu1 %vm429_vm1, %v1008_v52  ;;  %v1614_v52 = vld [vmem:[%s1936_s9] sm:$0xff]  }
 0x308   : > { %v1968_v53 = vpop.f32.mrb[0].mxu1 }
 0x309   : > { %v1498_v54 = vpop.f32.mrb[1].mxu1 }
 0x30a   : > { %v1970_v55 = vpop.f32.mrb[2].mxu1  ;;  %v519_v54 = vsel %vm481_vm3, %v1949_v44, 0.0 }
 0x30b   : > { %v1499_v56 = vpop.f32.mrb[3].mxu1 }
 0x30c   : > { %v492_v56 = vmul.f32 1.442695, %v490_v25 }
 0x30e   : > { %1619 = vpow2.f32 %v492_v56  ;;  %v512_v56 = vld [vmem:[#allocation3] sm:$0xff] }
 0x310   : > { %v658_v57 = vpop.f32.mrb[4].mxu1 }
 0x311   : > { %v1972_v58 = vmul.f32 0.17677669, %v658_v57  ;;  %v1504_v59 = vpop.f32.mrb[5].mxu1 }
 0x312   : > { %v661_v60 = vpop.f32.mrb[6].mxu1  ;;  %v516_v59 = vsel %vm481_vm3, %v1947_v43, 0.0 }
 0x313   : > { %v1974_v61 = vmul.f32 0.17677669, %v661_v60  ;;  %v1505_v62 = vpop.f32.mrb[7].mxu1  ;;  %v670_v63 = vsel %vm481_vm3, %v1972_v58, -inf  ;;  %v494_v60 = vmul.f32 1.442695, %v491_v28 }
 0x314   : > { %671 = vmax.xlane.f32.xlu1 %v670_v63 }
 0x315   : > { %v673_v0 = vsel %vm481_vm3, %v1974_v61, -inf  ;;  %1621 = vpow2.f32 %v494_v60 }
 0x316   : > { %674 = vmax.xlane.f32.xlu0 %v673_v0 }
 0x318   : > { %v857_v1 = vpop.f32.mrb[8].mxu1  ;;  %v2067_v57 = vpop.eup %1619 }
 0x319   : > { %v1980_v2 = vmul.f32 0.17677669, %v857_v1  ;;  %v1516_v3 = vpop.f32.mrb[9].mxu1 }
 0x31a   : > { %v860_v4 = vpop.f32.mrb[10].mxu1 }
 0x31b   : > { %v1982_v5 = vmul.f32 0.17677669, %v860_v4  ;;  %v1517_v7 = vpop.f32.mrb[11].mxu1  ;;  %v869_v8 = vsel %vm481_vm3, %v1980_v2, -inf }
 0x31c   : > { %870 = vmax.xlane.f32.xlu0 %v869_v8 }
 0x31d   : > { %v872_v9 = vsel %vm481_vm3, %v1982_v5, -inf }
 0x31e   : > { %873 = vmax.xlane.f32.xlu1 %v872_v9 }
 0x31f   : > { %v1622_v44 = vpop.eup %1621 }
 0x320   : > { %v1056_v10 = vpop.f32.mrb[12].mxu1 }
 0x321   : > { %v1988_v11 = vmul.f32 0.17677669, %v1056_v10  ;;  %v1528_v12 = vpop.f32.mrb[13].mxu1 }
 0x322   : > { %v1059_v13 = vpop.f32.mrb[14].mxu1 }
 0x323   : > { %v1068_v14 = vsel %vm481_vm3, %v1988_v11, -inf  ;;  %v1992_v15 = vmul.f32 0.17677669, %v1059_v13  ;;  %v1529_v16 = vpop.f32.mrb[15].mxu1 }
 0x324   : > { %1069 = vmax.xlane.f32.xlu0 %v1068_v14 }
 0x325   : > { %v1071_v17 = vsel %vm481_vm3, %v1992_v15, -inf }
 0x326   : > { %1072 = vmax.xlane.f32.xlu1 %v1071_v17 }
 0x3a1   : > { %v672_v19 = vpop.xlane.xlu1 %671 }
 0x3a2   : > { %v2001_v22 = vmax.f32 %v1996_v18, %v672_v19 }
 0x3a3   : > { %v675_v26 = vpop.xlane.xlu0 %674 }
 0x3a4   : > { %v678_v29 = vsub.f32 %v1996_v18, %v2001_v22  ;;  %795 = vst.msk [vmem:[#allocation2 + $0x10] sm:$0xff] %vm394_vm2, %v2001_v22  ;;  %v2008_v30 = vmax.f32 %v1998_v20, %v675_v26  ;;  %686 = vperm.xlu0 %1602, %v2001_v22  }
 0x3a6   : > { %v679_v32 = vsub.f32 %v1998_v20, %v2008_v30  ;;  %796 = vst.msk [vmem:[#allocation2 + $0x18] sm:$0xff] %vm394_vm2, %v2008_v30  ;;  %691 = vperm.xlu1 %1601, %v2008_v30   ;;  %v680_v16 = vmul.f32 1.442695, %v678_v29 }
 0x3a8   : > { %1133 = vrot.lane.b32.xlu0 %v1612_v31, %s1749_s11 }
 0x3a9   : > { %v871_v34 = vpop.xlane.xlu0 %870 }
 0x3aa   : > { %v2023_v36 = vmax.f32 %v2017_v33, %v871_v34 }
 0x3ab   : > { %v874_v37 = vpop.xlane.xlu1 %873 }
 0x3ac   : > { %v877_v38 = vsub.f32 %v2017_v33, %v2023_v36  ;;  %994 = vst.msk [vmem:[#allocation2 + $0x20] sm:$0xff] %vm394_vm2, %v2023_v36  ;;  %v2030_v39 = vmax.f32 %v2020_v35, %v874_v37  ;;  %885 = vperm.xlu1 %1601, %v2023_v36  }
 0x3ae   : > { %v878_v40 = vsub.f32 %v2020_v35, %v2030_v39  ;;  %995 = vst.msk [vmem:[#allocation2 + $0x28] sm:$0xff] %vm394_vm2, %v2030_v39 }
 0x3b0   : > { %890 = vperm.xlu1 %1601, %v2030_v39  }
 0x3b1   : > { %v1070_v45 = vpop.xlane.xlu0 %1069 }
 0x3b2   : > { %v2044_v47 = vmax.f32 %v2037_v41, %v1070_v45 }
 0x3b3   : > { %v1073_v48 = vpop.xlane.xlu1 %1072 }
 0x3b4   : > { %735 = vrot.lane.b32.xlu1 %v1613_v42, %s1747_s8  ;;  %v1076_v49 = vsub.f32 %v2037_v41, %v2044_v47  ;;  %1193 = vst.msk [vmem:[#allocation2 + $0x30] sm:$0xff] %vm394_vm2, %v2044_v47  ;;  %v2052_v50 = vmax.f32 %v2041_v46, %v1073_v48 }
 0x3b6   : > { %v1077_v51 = vsub.f32 %v2041_v46, %v2052_v50  ;;  %1194 = vst.msk [vmem:[#allocation2 + $0x38] sm:$0xff] %vm394_vm2, %v2052_v50 }
 0x3b8   : > { %1084 = vperm.xlu1 %1601, %v2044_v47  }
 0x3bc   : > { %1089 = vperm.xlu1 %1601, %v2052_v50  }
 0x3c0   : > { %934 = vrot.lane.b32.xlu1 %v1614_v52, %s1748_s10 }
 0x3c7   : > { %520 = vadd.xlane.f32.xlu0 %v519_v54 }
 0x3dd   : > { %531 = vperm.xlu0 %1602, %v2067_v57  }
 0x3e4   : > { %517 = vadd.xlane.f32.xlu1 %v516_v59  ;;  %v514_v59 = vmul.f32 %v2067_v57, %v512_v56 }
 0x3f5   : > { %536 = vperm.xlu1 %1601, %v1622_v44  }
 0x423   : > { %v687_v62 = vpop.permute.xlu0 %686 }
 0x424   : > { %v694_v21 = vsub.f32 %v1972_v58, %v687_v62 }
 0x425   : > { %v692_v23 = vpop.permute.xlu1 %691 }
 0x426   : > { %v696_v25 = vmul.f32 1.442695, %v694_v21  ;;  %v695_v63 = vsub.f32 %v1974_v61, %v692_v23 }
 0x427   : > { %v1134_v30 = vpop.permute.xlu0 %1133 }
 0x428   : > { %1623 = vpow2.f32 %v696_v25  ;;  %v698_v0 = vmul.f32 1.442695, %v695_v63  ;;  %v702_v25 = vld [vmem:[#allocation3 + $0x18] sm:$0xff] }
 0x42a   : > { %1625 = vpow2.f32 %v698_v0 }
 0x42b   : > { %v886_v1 = vpop.permute.xlu1 %885 }
 0x42c   : > { %v893_v43 = vsub.f32 %v1980_v2, %v886_v1  ;;  %v682_v2 = vmul.f32 1.442695, %v679_v32  ;;  %v513_v32 = vld [vmem:[#allocation3 + $0x8] sm:$0xff] }
 0x42d   : > { %v515_v34 = vmul.f32 %v1622_v44, %v513_v32 }
 0x42e   : > { %v895_v28 = vmul.f32 1.442695, %v893_v43 }
 0x42f   : > { %v891_v3 = vpop.permute.xlu1 %890 }
 0x430   : > { %v894_v24 = vsub.f32 %v1982_v5, %v891_v3 }
 0x432   : > { %v1624_v27 = vpop.eup %1623  ;;  %v897_v4 = vmul.f32 1.442695, %v894_v24  ;;  %v879_v24 = vmul.f32 1.442695, %v877_v38 }
 0x433   : > { %v736_v7 = vpop.permute.xlu1 %735  ;;  %v705_v8 = vsel %vm481_vm3, %v1624_v27, 0.0 }
 0x434   : > { %v1626_v58 = vpop.eup %1625  ;;  %1627 = vpow2.f32 %v897_v4  ;;  %706 = vadd.xlane.f32.xlu1 %v705_v8  ;;  %1507 = vmatpush3.bf16.msra.mxu0 %v736_v7  ;;  %v900_v4 = vld [vmem:[#allocation3 + $0x20] sm:$0xff] }
 0x435   : > { %v708_v61 = vsel %vm481_vm3, %v1626_v58, 0.0  ;;  %v729_v9 = vpack.c.bf16 %v1626_v58, %v1624_v27  ;;  %1518 = vmatprep.subr.bf16.mxu0 %v1743_v6  ;;  %1629 = vpow2.f32 %v895_v28  ;;  %v901_v58 = vld [vmem:[#allocation3 + $0x28] sm:$0xff] }
 0x436   : > { %709 = vadd.xlane.f32.xlu0 %v708_v61  ;;  %1631 = vpow2.f32 %v682_v2 }
 0x437   : > { %1509 = vmatmul.mubr.msk.bf16.vlgmr.msra.gmra.mrb[4].mxu0 %vm481_vm3, %v729_v9  ;;  %v1085_v5 = vpop.permute.xlu1 %1084 }
 0x438   : > { %v1092_v10 = vsub.f32 %v1988_v11, %v1085_v5  ;;  %1520 = vmatprep.mubr.msk.bf16.mxu0 %vm1744_vm0, %v1743_v6 }
 0x43a   : > { %v1094_v12 = vmul.f32 1.442695, %v1092_v10  ;;  %v1080_v10 = vmul.f32 1.442695, %v1077_v51 }
 0x43b   : > { %v1090_v13 = vpop.permute.xlu1 %1089 }
 0x43c   : > { %v1093_v14 = vsub.f32 %v1992_v15, %v1090_v13  ;;  %1633 = vpow2.f32 %v1094_v12 }
 0x43e   : > { %v1628_v17 = vpop.eup %1627  ;;  %v1096_v19 = vmul.f32 1.442695, %v1093_v14 }
 0x43f   : > { %v935_v20 = vpop.permute.xlu1 %934  ;;  %v1630_v26 = vpop.eup %1629  ;;  %v907_v54 = vsel %vm481_vm3, %v1628_v17, 0.0 }
 0x440   : > { %1635 = vpow2.f32 %v1096_v19  ;;  %1519 = vmatpush3.bf16.msra.mxu0 %v935_v20  ;;  %v928_v11 = vpack.c.bf16 %v1628_v17, %v1630_v26  ;;  %v1632_v31 = vpop.eup %1631  ;;  %v904_v52 = vsel %vm481_vm3, %v1630_v26, 0.0 }
 0x441   : > { %1637 = vpow2.f32 %v680_v16  ;;  %1530 = vmatprep.subr.bf16.mxu0 %v1743_v6  ;;  %v704_v43 = vmul.f32 %v1632_v31, %v702_v25  ;;  %v1099_v25 = vld [vmem:[#allocation3 + $0x30] sm:$0xff] }
 0x442   : > { %1639 = vpow2.f32 %v879_v24 }
 0x443   : > { %1521 = vmatmul.mubr.msk.bf16.vlgmr.msra.gmra.mrb[8].mxu0 %vm481_vm3, %v928_v11 }
 0x444   : > { %1531 = vmatpush3.bf16.msra.mxu0 %v1134_v30  ;;  %1532 = vmatprep.mubr.msk.bf16.mxu0 %vm1744_vm0, %v1743_v6 }
 0x445   : > { %724 = vperm.xlu1 %1601, %v1632_v31  }
 0x446   : > { %v2097_v15 = vpop.eup %1633 }
 0x44a   : > { %v2099_v18 = vpop.eup %1635 }
 0x44b   : > { %v1638_v22 = vpop.eup %1637  ;;  %v1127_v29 = vpack.c.bf16 %v2099_v18, %v2097_v15  ;;  %v1106_v32 = vsel %vm481_vm3, %v2099_v18, 0.0 }
 0x44c   : > { %719 = vperm.xlu0 %1602, %v1638_v22   ;;  %v1640_v27 = vpop.eup %1639 }
 0x44d   : > { %1533 = vmatmul.mubr.msk.bf16.vlgmr.msra.gmra.mrb[12].mxu0 %vm481_vm3, %v1127_v29  ;;  %v902_v61 = vmul.f32 %v1640_v27, %v900_v4  ;;  %v1103_v29 = vsel %vm481_vm3, %v2097_v15, 0.0 }
 0x454   : > { %v521_v37 = vpop.xlane.xlu0 %520 }
 0x455   : > { %v523_v42 = vadd.f32 %v521_v37, %v515_v34  ;;  %v1078_v34 = vmul.f32 1.442695, %v1076_v49 }
 0x457   : > { %526 = vst.msk [vmem:[#allocation3 + $0x8] sm:$0xff] %vm394_vm2, %v523_v42 }
 0x45c   : > { %v532_v45 = vpop.permute.xlu0 %531 }
 0x45d   : > { %v539_v6 = vmul.f32 0.0, %v532_v45 }
 0x45e   : > { %v1201_v17 = vld [vmem:[#allocation3 + $0x8] sm:$0xff] }
 0x45f   : > { %v592_v48 = vadd.f32 %v1968_v53, %v539_v6  ;;  %v701_v53 = vld [vmem:[#allocation3 + $0x10] sm:$0xff] }
 0x460   : > { %v703_v63 = vmul.f32 %v1638_v22, %v701_v53 }
 0x461   : > { %594 = vst.msk [vmem:[#allocation4] sm:$0xff] %vm429_vm1, %v592_v48 }
 0x468   : > { %v715_v41 = vld [vmem:[#allocation4] sm:$0xff] }
 0x469   : > { %905 = vadd.xlane.f32.xlu1 %v904_v52 }
 0x46b   : > { %908 = vadd.xlane.f32.xlu0 %v907_v54 }
 0x471   : > { %v518_v60 = vpop.xlane.xlu1 %517 }
 0x472   : > { %v522_v44 = vadd.f32 %v518_v60, %v514_v59 }
 0x474   : > { %525 = vst.msk [vmem:[#allocation3] sm:$0xff] %vm394_vm2, %v522_v44 }
 0x475   : > { %v537_v62 = vpop.permute.xlu1 %536 }
 0x476   : > { %v540_v21 = vmul.f32 0.0, %v537_v62 }
 0x478   : > { %v593_v23 = vadd.f32 %v1970_v55, %v540_v21  ;;  %v881_v55 = vmul.f32 1.442695, %v878_v40 }
 0x47a   : > { %595 = vst.msk [vmem:[#allocation4 + $0x8] sm:$0xff] %vm429_vm1, %v593_v23  ;;  %1641 = vpow2.f32 %v881_v55 }
 0x47b   : > { %1643 = vpow2.f32 %v1080_v10  ;;  %v1200_v37 = vld [vmem:[#allocation3] sm:$0xff] }
 0x47c   : > { %1645 = vrcp.f32 %v1201_v17 }
 0x481   : > { %v716_v49 = vld [vmem:[#allocation4 + $0x8] sm:$0xff] }
 0x484   : > { %v1642_v7 = vpop.eup %1641 }
 0x485   : > { %v903_v5 = vmul.f32 %v1642_v7, %v901_v58  ;;  %v1644_v20 = vpop.eup %1643 }
 0x486   : > { %v1646_v30 = vpop.eup %1645 }
 0x4c1   : > { %v707_v0 = vpop.xlane.xlu1 %706 }
 0x4c2   : > { %v711_v1 = vadd.f32 %v707_v0, %v703_v63 }
 0x4c3   : > { %v710_v3 = vpop.xlane.xlu0 %709 }
 0x4c4   : > { %713 = vst.msk [vmem:[#allocation3 + $0x10] sm:$0xff] %vm394_vm2, %v711_v1  ;;  %v712_v57 = vadd.f32 %v710_v3, %v704_v43  ;;  %v1100_v1 = vld [vmem:[#allocation3 + $0x38] sm:$0xff] }
 0x4c5   : > { %v2121_v28 = vpop.permute.xlu1 %724  ;;  %v1102_v3 = vmul.f32 %v1644_v20, %v1100_v1 }
 0x4c6   : > { %714 = vst.msk [vmem:[#allocation3 + $0x18] sm:$0xff] %vm394_vm2, %v712_v57  ;;  %v728_v54 = vmul.f32 %v2121_v28, %v716_v49 }
 0x4cb   : > { %v2123_v8 = vpop.permute.xlu0 %719  ;;  %v1220_v42 = vld [vmem:[#allocation3 + $0x10] sm:$0xff] }
 0x4cc   : > { %v727_v47 = vmul.f32 %v2123_v8, %v715_v41 }
 0x4cd   : > { %v1221_v19 = vld [vmem:[#allocation3 + $0x18] sm:$0xff] }
 0x4ce   : > { %1647 = vrcp.f32 %v1221_v19 }
 0x4d8   : > { %v1648_v31 = vpop.eup %1647 }
 0x4f6   : > { %v906_v9 = vpop.xlane.xlu1 %905 }
 0x4f7   : > { %v910_v2 = vadd.f32 %v906_v9, %v902_v61 }
 0x4f8   : > { %v909_v33 = vpop.xlane.xlu0 %908 }
 0x4f9   : > { %912 = vst.msk [vmem:[#allocation3 + $0x20] sm:$0xff] %vm394_vm2, %v910_v2  ;;  %v911_v36 = vadd.f32 %v909_v33, %v903_v5 }
 0x4fb   : > { %913 = vst.msk [vmem:[#allocation3 + $0x28] sm:$0xff] %vm394_vm2, %v911_v36 }
 0x500   : > { %v1240_v6 = vld [vmem:[#allocation3 + $0x20] sm:$0xff] }
 0x502   : > { %v1241_v46 = vld [vmem:[#allocation3 + $0x28] sm:$0xff] }
 0x503   : > { %1649 = vrcp.f32 %v1241_v46 }
 0x504   : > { %1651 = vpow2.f32 %v1078_v34 }
 0x505   : > { %1653 = vrcp.f32 %v1200_v37 }
 0x506   : > { %1655 = vrcp.f32 %v1220_v42 }
 0x507   : > { %1657 = vrcp.f32 %v1240_v6 }
 0x50a   : > { %v775_v35 = vpop.f32.mrb[4].mxu0 }
 0x50b   : > { %784 = vrot.lane.b32.xlu1 %v775_v35, %s1749_s11  ;;  %v1510_v38 = vpop.f32.mrb[5].mxu0 }
 0x50c   : > { %v778_v39 = vpop.f32.mrb[6].mxu0 }
 0x50d   : > { %786 = vrot.lane.b32.xlu0 %v778_v39, %s1749_s11  ;;  %v1511_v40 = vpop.f32.mrb[7].mxu0  ;;  %v1650_v22 = vpop.eup %1649 }
 0x50e   : > { %v1652_v45 = vpop.eup %1651 }
 0x50f   : > { %v1654_v15 = vpop.eup %1653  ;;  %v1101_v63 = vmul.f32 %v1652_v45, %v1099_v25 }
 0x510   : > { %v1656_v18 = vpop.eup %1655 }
 0x511   : > { %918 = vperm.xlu0 %1602, %v1640_v27   ;;  %v1658_v48 = vpop.eup %1657 }
 0x516   : > { %v974_v12 = vpop.f32.mrb[8].mxu0 }
 0x517   : > { %983 = vrot.lane.b32.xlu0 %v974_v12, %s1748_s10  ;;  %v1522_v13 = vpop.f32.mrb[9].mxu0 }
 0x518   : > { %v977_v14 = vpop.f32.mrb[10].mxu0 }
 0x519   : > { %v1523_v16 = vpop.f32.mrb[11].mxu0 }
 0x51b   : > { %985 = vrot.lane.b32.xlu0 %v977_v14, %s1748_s10 }
 0x51f   : > { %1122 = vperm.xlu0 %1602, %v1644_v20  }
 0x520   : > { %v1173_v26 = vpop.f32.mrb[12].mxu0 }
 0x521   : > { %v1534_v11 = vpop.f32.mrb[13].mxu0 }
 0x522   : > { %v1176_v50 = vpop.f32.mrb[14].mxu0 }
 0x523   : > { %1184 = vrot.lane.b32.xlu0 %v1176_v50, %s1747_s8  ;;  %v1535_v51 = vpop.f32.mrb[15].mxu0 }
 0x527   : > { %1211 = vperm.xlu0 %1602, %v1646_v30  }
 0x52b   : > { %1231 = vperm.xlu0 %1602, %v1648_v31  }
 0x52f   : > { %1104 = vadd.xlane.f32.xlu1 %v1103_v29  ;;  %1251 = vperm.xlu0 %1602, %v1650_v22  }
 0x533   : > { %1107 = vadd.xlane.f32.xlu1 %v1106_v32 }
 0x544   : > { %923 = vperm.xlu1 %1601, %v1642_v7  }
 0x548   : > { %1117 = vperm.xlu1 %1601, %v1652_v45  }
 0x54c   : > { %1182 = vrot.lane.b32.xlu1 %v1173_v26, %s1747_s8 }
 0x550   : > { %1206 = vperm.xlu1 %1601, %v1654_v15  }
 0x554   : > { %1226 = vperm.xlu1 %1601, %v1656_v18  }
 0x558   : > { %1246 = vperm.xlu1 %1601, %v1658_v48  }
 0x57d   : > { %v785_v52 = vpop.permute.xlu1 %784 }
 0x57e   : > { %v790_v56 = vadd.f32 %v785_v52, %v727_v47 }
 0x57f   : > { %v787_v59 = vpop.permute.xlu0 %786 }
 0x580   : > { %793 = vst.msk [vmem:[#allocation4] sm:$0xff] %vm792_vm4, %v790_v56  ;;  %v791_v60 = vadd.f32 %v787_v59, %v728_v54 }
 0x582   : > { %794 = vst.msk [vmem:[#allocation4 + $0x8] sm:$0xff] %vm792_vm4, %v791_v60 }
 0x587   : > { %v914_v62 = vld [vmem:[#allocation4] sm:$0xff] }
 0x589   : > { %v915_v27 = vld [vmem:[#allocation4 + $0x8] sm:$0xff] }
 0x590   : > { %v919_v44 = vpop.permute.xlu0 %918 }
 0x591   : > { %v926_v21 = vmul.f32 %v919_v44, %v914_v62 }
 0x594   : > { %v984_v23 = vpop.permute.xlu0 %983 }
 0x595   : > { %v989_v53 = vadd.f32 %v984_v23, %v926_v21 }
 0x597   : > { %992 = vst.msk [vmem:[#allocation4] sm:$0xff] %vm991_vm5, %v989_v53 }
 0x598   : > { %v986_v4 = vpop.permute.xlu0 %985 }
 0x59e   : > { %v1113_v61 = vld [vmem:[#allocation4] sm:$0xff]  ;;  %v1123_v5 = vpop.permute.xlu0 %1122 }
 0x5a2   : > { %v1185_v40 = vpop.permute.xlu0 %1184 }
 0x5a6   : > { %v1212_v17 = vpop.permute.xlu0 %1211 }
 0x5aa   : > { %v1232_v50 = vpop.permute.xlu0 %1231 }
 0x5ae   : > { %v1252_v32 = vpop.permute.xlu0 %1251 }
 0x5bc   : > { %v1105_v0 = vpop.xlane.xlu1 %1104 }
 0x5bd   : > { %v1109_v43 = vadd.f32 %v1105_v0, %v1101_v63 }
 0x5bf   : > { %1111 = vst.msk [vmem:[#allocation3 + $0x30] sm:$0xff] %vm394_vm2, %v1109_v43 }
 0x5c0   : > { %v1108_v57 = vpop.xlane.xlu1 %1107 }
 0x5c1   : > { %v1110_v24 = vadd.f32 %v1108_v57, %v1102_v3 }
 0x5c3   : > { %1112 = vst.msk [vmem:[#allocation3 + $0x38] sm:$0xff] %vm394_vm2, %v1110_v24 }
 0x5c4   : > { %v924_v55 = vpop.permute.xlu1 %923 }
 0x5c5   : > { %v927_v28 = vmul.f32 %v924_v55, %v915_v27 }
 0x5c6   : > { %v1260_v7 = vld [vmem:[#allocation3 + $0x30] sm:$0xff] }
 0x5c7   : > { %v990_v8 = vadd.f32 %v986_v4, %v927_v28  ;;  %1659 = vrcp.f32 %v1260_v7 }
 0x5c8   : > { %v1118_v58 = vpop.permute.xlu1 %1117 }
 0x5c9   : > { %993 = vst.msk [vmem:[#allocation4 + $0x8] sm:$0xff] %vm991_vm5, %v990_v8  ;;  %v1125_v2 = vmul.f32 %v1118_v58, %v1113_v61 }
 0x5ca   : > { %v1261_v9 = vld [vmem:[#allocation3 + $0x38] sm:$0xff] }
 0x5cb   : > { %1661 = vrcp.f32 %v1261_v9 }
 0x5cc   : > { %v1183_v33 = vpop.permute.xlu1 %1182 }
 0x5cd   : > { %v1188_v36 = vadd.f32 %v1183_v33, %v1125_v2 }
 0x5cf   : > { %1191 = vst.msk [vmem:[#allocation4] sm:$0xff] %vm1190_vm6, %v1188_v36 }
 0x5d0   : > { %v1114_v35 = vld [vmem:[#allocation4 + $0x8] sm:$0xff]  ;;  %v1207_v14 = vpop.permute.xlu1 %1206 }
 0x5d1   : > { %v1660_v38 = vpop.eup %1659  ;;  %v1126_v39 = vmul.f32 %v1123_v5, %v1114_v35 }
 0x5d2   : > { %1266 = vperm.xlu1 %1601, %v1660_v38  }
 0x5d3   : > { %v1189_v10 = vadd.f32 %v1185_v40, %v1126_v39 }
 0x5d4   : > { %v1227_v11 = vpop.permute.xlu1 %1226 }
 0x5d5   : > { %v1662_v12 = vpop.eup %1661  ;;  %1192 = vst.msk [vmem:[#allocation4 + $0x8] sm:$0xff] %vm1190_vm6, %v1189_v10 }
 0x5d6   : > { %v1198_v13 = vld [vmem:[#allocation4] sm:$0xff]  ;;  %1271 = vperm.xlu0 %1602, %v1662_v12  }
 0x5d7   : > { %v1214_v16 = vmul.f32 %v1207_v14, %v1198_v13 }
 0x5d8   : > { %v1247_v22 = vpop.permute.xlu1 %1246 }
 0x5d9   : > { %1216 = vst.msk [vmem:[#allocation4] sm:$0xff] %vm429_vm1, %v1214_v16 }
 0x5dc   : > { %v1199_v19 = vld [vmem:[#allocation4 + $0x8] sm:$0xff] }
 0x5dd   : > { %v1215_v20 = vmul.f32 %v1212_v17, %v1199_v19 }
 0x5df   : > { %1217 = vst.msk [vmem:[#allocation4 + $0x8] sm:$0xff] %vm429_vm1, %v1215_v20 }
 0x5e0   : > { %v1218_v26 = vld [vmem:[#allocation4] sm:$0xff] }
 0x5e1   : > { %v1234_v46 = vmul.f32 %v1227_v11, %v1218_v26 }
 0x5e3   : > { %1236 = vst.msk [vmem:[#allocation4] sm:$0xff] %vm792_vm4, %v1234_v46 }
 0x5e6   : > { %v1219_v51 = vld [vmem:[#allocation4 + $0x8] sm:$0xff] }
 0x5e7   : > { %v1235_v30 = vmul.f32 %v1232_v50, %v1219_v51 }
 0x5e9   : > { %1237 = vst.msk [vmem:[#allocation4 + $0x8] sm:$0xff] %vm792_vm4, %v1235_v30 }
 0x5ea   : > { %v1238_v31 = vld [vmem:[#allocation4] sm:$0xff] }
 0x5eb   : > { %v1254_v29 = vmul.f32 %v1247_v22, %v1238_v31 }
 0x5ed   : > { %1256 = vst.msk [vmem:[#allocation4] sm:$0xff] %vm991_vm5, %v1254_v29 }
 0x5f0   : > { %v1239_v34 = vld [vmem:[#allocation4 + $0x8] sm:$0xff] }
 0x5f1   : > { %v1255_v37 = vmul.f32 %v1252_v32, %v1239_v34 }
 0x5f3   : > { %1257 = vst.msk [vmem:[#allocation4 + $0x8] sm:$0xff] %vm991_vm5, %v1255_v37 }
 0x5f4   : > { %v1258_v42 = vld [vmem:[#allocation4] sm:$0xff] }
 0x5fa   : > { %v1259_v15 = vld [vmem:[#allocation4 + $0x8] sm:$0xff] }
 0x651   : > { %v1267_v45 = vpop.permute.xlu1 %1266 }
 0x652   : > { %v1274_v6 = vmul.f32 %v1267_v45, %v1258_v42 }
 0x654   : > { %1276 = vst.msk [vmem:[#allocation4] sm:$0xff] %vm1190_vm6, %v1274_v6 }
 0x655   : > { %v1272_v18 = vpop.permute.xlu0 %1271 }
 0x656   : > { %v1275_v48 = vmul.f32 %v1272_v18, %v1259_v15 }
 0x658   : > { %1277 = vst.msk [vmem:[#allocation4 + $0x8] sm:$0xff] %vm1190_vm6, %v1275_v48 }
 0x65b   : > { %v1278_v41 = vld [vmem:[#allocation4] sm:$0xff] }
 0x65c   : > { %1280 = vst [vmem:[%s384_s21] sm:$0xff] %v1278_v41 }
 0x65f   : > { %v1279_v47 = vld [vmem:[#allocation4 + $0x8] sm:$0xff] }
 0x660   : > { %1281 = vst [vmem:[%s384_s21 + $0x8] sm:$0xff] %v1279_v47 }
 0x661   : > { %1676 = shalt.err (!%p1673_p7)
}
 0x662   : > { %s1677_s7 = scalar_lea.hbm %s2166_s29, 256  ;;  %s1681_s10 = scalar_lea.hbm %s2220_s3, 512 }
 0x663   : > { %p1678_p8 = scmp.ne.s32.totalorder %s2166_s29, %s1677_s7  ;;  %p1682_p13 = scmp.lt.u32.totalorder %s2166_s29, %s2220_s3 }
 0x664   : > { %p1683_p0 = scmp.lt.u32.totalorder %s1681_s10, %s1677_s7  ;;  %p1685_p2 = scmp.lt.u32.totalorder %s1677_s7, %s2166_s29 }
 0x665   : > { %p1679_p11 = pnand %p1678_p8, %p1816_p5 }
 0x666   : > { %p1684_p1 = por %p1683_p0, %p1682_p13 }
 0x667   : > { %p1680_p12 = pneg %p1679_p11 }
 0x668   : > { %p1686_p3 = por %p1685_p2, %p1684_p1 }
 0x66a   : > { %p1687_p4 = pnand %p1686_p3, %p1680_p12 }
 0x66c   : > { %1690 = shalt.err (!%p1687_p4)
}
 0x66d   : > { %s1751_s19 = smov 128   ;;  %s1752_s21 = smov 8  }
 0x66e   : > { %1537 = dma.vmem_to_hbm [thread:$0]  (%p1816_p5), %s2168_s24, 256, %s2166_s29, %s1283_s30, %s1751_s19, %s1751_s19, %s1752_s21  }
 0x66f PF: > { %s1313_s27 = sand.u32 1, %s1721_s12   ;;  %p1540_p6 = pnand %p1430_p10, %p1827_p9 }
 0x670   : > { %s1314_s28 = scalar_lea.sflag [#allocation9], %s1313_s27 }
 0x671   : > { %1716 = dma.done.wait (!%p1540_p6), %s1314_s28, 256  }
 0x672   : > { %1718 = vsyncadd (!%p1540_p6), %s1314_s28, 4294967040  ;;  %s16_s17 = sadd.s32 1, %s1741_s17   ;;  %s2224_s12 = smov %s1725_s13 }
 0x673   : > { %p13_p7 = scmp.ge.s32.totalorder %s16_s17, 4   ;;  %s2225_s13 = smov %s1729_s14 }
 0x674   : > { %s2226_s14 = smov %s1825_s25  ;;  %s2227_s15 = smov %s1737_s16 }
 0x675   : > { %s2228_s16 = smov %s2230_s20  ;;  %15 = sbr.rel (!%p13_p7) target bundleno = 4 (0x4), region = 225 }
 0x67c   :  { %1319 = vsyncpa [#allocation9], 1 }
 0x67d   :  { %1321 = vsyncpa [#allocation9 + $0x1], 1 }

</bundles_post_ra>
